<compile_context>
chip_gen: v6e
topology: v6e:2x2x1
jax: 0.10.0
libtpu: 0.0.40
codegen_flags: <defaults>
</compile_context>

<pallas_src>
import functools

import jax
import jax.numpy as jnp
from jax import lax
from jax.experimental import pallas as pl
from jax.experimental.pallas import tpu as pltpu


# Perf/accuracy knobs (review items: bf16 MXU ~3-6x throughput, bf16 intermediates ~2x less
# HBM traffic). Kept False by default to preserve exact f32 module semantics.
USE_BF16_MXU = False
INTERMEDIATE_DTYPE = jnp.float32   # dtype of the yr/yi HBM round trip between pass 1 and 2


# ----------------------------------------------------------------------------
# Tile / VMEM sizing helpers (per-generation budgets).
# ----------------------------------------------------------------------------
def _vmem_limit_bytes():
    """Scoped-VMEM budget: ~48 MiB on v7x (64 MiB phys), ~96 MiB on v5e/v6e (128 MiB)."""
    cap = 64 * 1024 * 1024                       # conservative fallback (v7x-sized)
    try:
        cap = int(pltpu.get_tpu_info().vmem_capacity_bytes)
    except Exception:
        pass
    return max(32 * 1024 * 1024, min(cap * 3 // 4, 100 * 1024 * 1024))


def _pick_w_tile(WO, C_in, C_out, target_k=256):
    """Largest W tile with TW*C_in <= target_k; lane-dense (%128) whenever actually tiling."""
    if WO * C_in <= target_k:
        return WO
    cands = [d for d in range(1, WO + 1)
             if WO % d == 0 and d * C_in <= target_k
             and (d * C_in) % 128 == 0 and (d * C_out) % 128 == 0]
    return max(cands) if cands else WO


def _h_tile_candidates(HO, target=256):
    cands = {d for d in range(8, min(HO, target) + 1, 8) if HO % d == 0}
    if HO <= target:
        cands.add(HO)
    return sorted(cands, reverse=True) or [HO]


def _pass1_block_bytes(TH, TW, C_in, C_out, KH, KW, Hpad):
    twi, two = TW * C_in, TW * C_out
    x_blk = 2 * KW * Hpad * twi * 4              # double-buffered shifted-input tile
    wts = 2 * KH * KW * twi * 4 + 3 * twi * two * 4
    outs = 2 * 2 * TH * two * 4                  # yr/yi output tiles, double-buffered
    tmps = 8 * TH * max(twi, two) * 4            # zr/zi/m1-m3/yr/yi live values
    stats = 3 * 8 * two * 4
    return x_blk + wts + outs + tmps + stats


# ----------------------------------------------------------------------------
# Pass 1: complex depthwise dilated conv + W-tiled complex pointwise conv (MXU) + BN stats.
# ----------------------------------------------------------------------------
def _make_conv_stats_kernel(TH, TW, C_in, C_out, KH, KW, DIL, mxu_dtype):
    TWC_in = TW * C_in
    TWC_out = TW * C_out

    def kernel(x_ref, wdr_ref, wdi_ref, bwr_ref, bwi_ref, bws_ref,
               yr_ref, yi_ref, stats_ref, stats_acc):
        # x_ref      : (KW, Hpad, TW*C_in)   KW-pre-shifted padded real input (lane-aligned taps)
        # wdr/wdi    : (KH*KW, TW*C_in)      depthwise weights tiled over the W tile
        # bwr/bwi/bws: (TW*C_in, TW*C_out)   W-tiled block-diagonal pointwise weights
        # yr/yi      : (TH, TW*C_out)        lane-dense output tile
        # stats_ref  : (8, TW*C_out)         per-(w,c) sums, written once per (n, wb)
        # stats_acc  : (8, TW*C_out) f32     VMEM scratch accumulator (single packed RMW/step)
        rb = pl.program_id(2)
        row0 = pl.multiple_of(rb * TH, TH)

        # ---- complex depthwise dilated conv (imag(input) == 0) ----
        zr = jnp.zeros((TH, TWC_in), jnp.float32)
        zi = jnp.zeros((TH, TWC_in), jnp.float32)
        for i in range(KH):
            for j in range(KW):
                k = i * KW + j
                # W-shift pre-baked in the wrapper -> lane start 0 (no lane rotates)
                patch = x_ref[j, pl.ds(row0 + i * DIL, TH), :]
                zr = zr + patch * wdr_ref[k:k + 1, :]
                zi = zi + patch * wdi_ref[k:k + 1, :]

        # ---- complex pointwise 1x1 conv on the MXU (Gauss: 3 matmuls instead of 4) ----
        m1 = jnp.dot(zr.astype(mxu_dtype), bwr_ref[...], preferred_element_type=jnp.float32)
        m2 = jnp.dot(zi.astype(mxu_dtype), bwi_ref[...], preferred_element_type=jnp.float32)
        m3 = jnp.dot((zr + zi).astype(mxu_dtype), bws_ref[...],
                     preferred_element_type=jnp.float32)
        yr = m1 - m2
        yi = m3 - m1 - m2

        yr_ref[...] = yr.astype(yr_ref.dtype)      # lane-dense (TH, TW*C_out) stores
        yi_ref[...] = yi.astype(yi_ref.dtype)

        # ---- single-pass BN statistics in VMEM scratch: one packed (8, X) RMW per step ----
        @pl.when(rb == 0)
        def _():
            stats_acc[...] = jnp.zeros_like(stats_acc)

        packed = jnp.concatenate(
            [jnp.sum(yr, axis=0, keepdims=True),
             jnp.sum(yi, axis=0, keepdims=True),
             jnp.sum(yr * yr, axis=0, keepdims=True),
             jnp.sum(yi * yi, axis=0, keepdims=True),
             jnp.sum(yr * yi, axis=0, keepdims=True),
             jnp.zeros((3, TWC_out), jnp.float32)], axis=0)
        stats_acc[...] = stats_acc[...] + packed

        @pl.when(rb == pl.num_programs(2) - 1)
        def _():
            stats_ref[...] = stats_acc[...]

    return kernel


# ----------------------------------------------------------------------------
# Pass 2: per-channel whitening+affine (folded into 6 coefficients) and |z|.
# ----------------------------------------------------------------------------
def _whiten_abs_kernel(yr_ref, yi_ref, coef_ref, out_ref):
    yr = yr_ref[...].astype(jnp.float32)
    yi = yi_ref[...].astype(jnp.float32)
    a_rr = coef_ref[0:1, :]
    a_ri = coef_ref[1:2, :]
    a_ir = coef_ref[2:3, :]
    a_ii = coef_ref[3:4, :]
    c_r = coef_ref[4:5, :]
    c_i = coef_ref[5:6, :]
    outr = yr * a_rr + yi * a_ri + c_r
    outi = yr * a_ir + yi * a_ii + c_i
    out_ref[...] = jnp.sqrt(outr * outr + outi * outi)   # lane-dense store


# ----------------------------------------------------------------------------
# Wrapper: NCHW in / NCHW out (matching the PyTorch module).
# ----------------------------------------------------------------------------
@functools.partial(jax.jit, static_argnames=("kernel_size", "stride", "padding", "dilation"))
def cplx_dil_conv(x_nchw, wdr_oihw, wdi_oihw, wpr_oihw, wpi_oihw, wbn, bbn,
                  *, kernel_size, stride, padding, dilation):
    N, C_in, H, W = x_nchw.shape
    C_out = wpr_oihw.shape[0]
    KH = KW = kernel_size
    DIL = dilation
    EPS = 1e-5

    # dense (stride-1) conv output extents; strided output is a subsample of this grid
    HO1 = H + 2 * padding - DIL * (KH - 1)
    WO1 = W + 2 * padding - DIL * (KW - 1)
    HOs = (HO1 - 1) // stride + 1
    WOs = (WO1 - 1) // stride + 1
    Hpad = H + 2 * padding

    mxu_dtype = jnp.bfloat16 if USE_BF16_MXU else jnp.float32
    mxu_isize = 2 if USE_BF16_MXU else 4
    y_isize = 2 if INTERMEDIATE_DTYPE == jnp.bfloat16 else 4
    vmem_limit = _vmem_limit_bytes()

    # ---- tile selection (W tile bounds MXU K-dim to ~128-256; H tile VMEM-budgeted) ----
    TW = _pick_w_tile(WO1, C_in, C_out)
    WB = WO1 // TW
    TWC_in = TW * C_in
    TWC_out = TW * C_out
    TH = None
    for cand in _h_tile_candidates(HO1):
        if _pass1_block_bytes(cand, TW, C_in, C_out, KH, KW, Hpad) <= vmem_limit // 2:
            TH = cand
            break
    if TH is None:
        TH = _h_tile_candidates(HO1)[-1]
    RB = HO1 // TH

    # glue: NCHW -> padded NHWC -> KW-pre-shifted lane-dense (N, KW, Hpad, WO1*C_in)
    # TODO(synk): accepting NHWC at the module boundary would remove this full-array relayout.
    x_nhwc = jnp.transpose(x_nchw, (0, 2, 3, 1)).astype(jnp.float32)
    x_pad = jnp.pad(x_nhwc, ((0, 0), (padding, padding), (padding, padding), (0, 0)))
    x_sh = jnp.stack([x_pad[:, :, j * DIL:j * DIL + WO1, :] for j in range(KW)], axis=1)
    x_sh = x_sh.reshape(N, KW, Hpad, WO1 * C_in)

    # glue: depthwise (C_in,1,KH,KW) -> (KH*KW, C_in) -> tiled along the W tile
    wdr_kc = jnp.transpose(wdr_oihw[:, 0], (1, 2, 0)).reshape(KH * KW, C_in)
    wdi_kc = jnp.transpose(wdi_oihw[:, 0], (1, 2, 0)).reshape(KH * KW, C_in)
    wdr_flat = jnp.tile(wdr_kc, (1, TW)).astype(jnp.float32)
    wdi_flat = jnp.tile(wdi_kc, (1, TW)).astype(jnp.float32)

    # glue: pointwise (C_out,C_in,1,1) -> W-tiled block-diagonal (TW*C_in, TW*C_out)
    wr = jnp.transpose(wpr_oihw[:, :, 0, 0], (1, 0)).astype(jnp.float32)   # (C_in, C_out)
    wi = jnp.transpose(wpi_oihw[:, :, 0, 0], (1, 0)).astype(jnp.float32)
    eye_w = jnp.eye(TW, dtype=jnp.float32)
    bwr_f = jnp.einsum("wv,io->wivo", eye_w, wr).reshape(TWC_in, TWC_out)
    bwi_f = jnp.einsum("wv,io->wivo", eye_w, wi).reshape(TWC_in, TWC_out)
    bws_f = bwr_f + bwi_f
    bwr, bwi, bws = (a.astype(mxu_dtype) for a in (bwr_f, bwi_f, bws_f))

    conv_kernel = _make_conv_stats_kernel(TH, TW, C_in, C_out, KH, KW, DIL, mxu_dtype)

    flops1 = N * WB * RB * (4 * TH * TWC_in * KH * KW
                            + 6 * TH * TWC_in * TWC_out + 14 * TH * TWC_out)
    bytes1 = (4 * (x_sh.size + wdr_flat.size + wdi_flat.size)
              + 3 * mxu_isize * TWC_in * TWC_out
              + 2 * y_isize * N * HO1 * WO1 * C_out + 4 * N * 8 * WO1 * C_out)

    yr_full, yi_full, stats_raw = pl.pallas_call(
        conv_kernel,
        out_shape=(jax.ShapeDtypeStruct((N, HO1, WO1 * C_out), INTERMEDIATE_DTYPE),
                   jax.ShapeDtypeStruct((N, HO1, WO1 * C_out), INTERMEDIATE_DTYPE),
                   jax.ShapeDtypeStruct((N, 8, WO1 * C_out), jnp.float32)),
        grid=(N, WB, RB),
        in_specs=[
            pl.BlockSpec((None, KW, Hpad, TWC_in), lambda n, wb, rb: (n, 0, 0, wb)),
            pl.BlockSpec((KH * KW, TWC_in), lambda n, wb, rb: (0, 0)),
            pl.BlockSpec((KH * KW, TWC_in), lambda n, wb, rb: (0, 0)),
            pl.BlockSpec((TWC_in, TWC_out), lambda n, wb, rb: (0, 0)),
            pl.BlockSpec((TWC_in, TWC_out), lambda n, wb, rb: (0, 0)),
            pl.BlockSpec((TWC_in, TWC_out), lambda n, wb, rb: (0, 0)),
        ],
        out_specs=(
            pl.BlockSpec((None, TH, TWC_out), lambda n, wb, rb: (n, rb, wb)),
            pl.BlockSpec((None, TH, TWC_out), lambda n, wb, rb: (n, rb, wb)),
            pl.BlockSpec((None, 8, TWC_out), lambda n, wb, rb: (n, 0, wb)),
        ),
        scratch_shapes=[pltpu.VMEM((8, TWC_out), jnp.float32)],
        compiler_params=pltpu.CompilerParams(
            # two leading parallel axes (N x W-blocks) keep both v7x TCs busy even for small N
            dimension_semantics=("parallel", "parallel", "arbitrary"),
            vmem_limit_bytes=vmem_limit),
        cost_estimate=pl.CostEstimate(flops=flops1, transcendentals=0,
                                      bytes_accessed=bytes1),
    )(x_sh, wdr_flat, wdi_flat, bwr, bwi, bws)

    # ---- BN statistics -> whitening coefficients (tiny per-channel math in XLA) ----
    if stride == 1:
        yr_s = yr_full.reshape(N * HOs, WOs * C_out)
        yi_s = yi_full.reshape(N * HOs, WOs * C_out)
        cnt = float(N * HOs * WOs)
        s = jnp.sum(stats_raw, axis=0).reshape(8, WO1, C_out).sum(axis=1)   # (8, C_out)
        mr, mi = s[0] / cnt, s[1] / cnt
        vrr = s[2] / cnt - mr * mr + EPS
        vii = s[3] / cnt - mi * mi + EPS
        vri = s[4] / cnt - mr * mi
    else:
        # TODO(synk): stride > 1 still reuses the dense stride-1 conv, subsamples and
        # recomputes batch stats in plain JAX (~stride^2 wasted work); a genuinely strided
        # pass-1 path (strided row starts / out_specs) would remove that.
        yr4 = yr_full.reshape(N, HO1, WO1, C_out)[:, ::stride, ::stride, :].astype(jnp.float32)
        yi4 = yi_full.reshape(N, HO1, WO1, C_out)[:, ::stride, ::stride, :].astype(jnp.float32)
        yr_s = yr4.reshape(N * HOs, WOs * C_out).astype(INTERMEDIATE_DTYPE)
        yi_s = yi4.reshape(N * HOs, WOs * C_out).astype(INTERMEDIATE_DTYPE)
        mr = yr4.mean(axis=(0, 1, 2))
        mi = yi4.mean(axis=(0, 1, 2))
        vrr = jnp.mean(yr4 * yr4, axis=(0, 1, 2)) - mr * mr + EPS
        vii = jnp.mean(yi4 * yi4, axis=(0, 1, 2)) - mi * mi + EPS
        vri = jnp.mean(yr4 * yi4, axis=(0, 1, 2)) - mr * mi

    sqrdet = jnp.sqrt(vrr * vii - vri * vri)
    denom = sqrdet * jnp.sqrt(vrr + 2.0 * sqrdet + vii)
    p = (vii + sqrdet) / denom
    q = -vri / denom
    r = -vri / denom
    t = (vrr + sqrdet) / denom
    w00, w01, w10, w11 = wbn[0], wbn[1], wbn[2], wbn[3]
    br, bi = bbn[0], bbn[1]
    # compose whitening 2x2 with the BN affine + bias + mean-subtraction: 6 coefficients
    a_rr = p * w00 + q * w01
    a_ri = r * w00 + t * w01
    a_ir = p * w10 + q * w11
    a_ii = r * w10 + t * w11
    c_r = br - mr * a_rr - mi * a_ri
    c_i = bi - mr * a_ir - mi * a_ii
    zero = jnp.zeros_like(a_rr)
    coef = jnp.tile(jnp.stack([a_rr, a_ri, a_ir, a_ii, c_r, c_i, zero, zero], axis=0),
                    (1, WOs))                                               # (8, WOs*C_out)

    # ---- pass 2: whitening + affine + |z|; N and H fused into one large row axis ----
    WOCs = WOs * C_out
    ROWS = N * HOs
    if ROWS > 512:
        cands = [d for d in range(8, 513, 8) if ROWS % d == 0]
        TR2 = max(cands) if cands else ROWS
    else:
        TR2 = ROWS
    RB2 = ROWS // TR2
    flops2 = ROWS * WOCs * 12
    bytes2 = 2 * y_isize * ROWS * WOCs + 4 * ROWS * WOCs + 4 * 8 * WOCs

    out_flat = pl.pallas_call(
        _whiten_abs_kernel,
        out_shape=jax.ShapeDtypeStruct((ROWS, WOCs), jnp.float32),
        grid=(RB2,),
        in_specs=[
            pl.BlockSpec((TR2, WOCs), lambda rb: (rb, 0)),
            pl.BlockSpec((TR2, WOCs), lambda rb: (rb, 0)),
            pl.BlockSpec((8, WOCs), lambda rb: (0, 0)),
        ],
        out_specs=pl.BlockSpec((TR2, WOCs), lambda rb: (rb, 0)),
        compiler_params=pltpu.CompilerParams(
            dimension_semantics=("parallel",),
            vmem_limit_bytes=vmem_limit),
        cost_estimate=pl.CostEstimate(flops=flops2, transcendentals=ROWS * WOCs,
                                      bytes_accessed=bytes2),
    )(yr_s, yi_s, coef)

    # glue: lane-dense (N*HOs, WOs*C_out) -> NCHW
    # TODO(synk): when WOs*C_out is a multiple of 128 this relayout could be folded into
    # pass 2's out_spec (channel-major blocks) to save one full HBM pass.
    return jnp.transpose(out_flat.reshape(N, HOs, WOs, C_out), (0, 3, 1, 2))


# ----------------------------------------------------------------------------
# Pure-JAX reference (same math, including the BN affine) for a self-check.
# ----------------------------------------------------------------------------
def reference_forward(x, wdr, wdi, wpr, wpi, wbn, bbn,
                      *, kernel_size, stride, padding, dilation):
    C_in = x.shape[1]
    C_out = wpr.shape[0]
    dn = ("NCHW", "OIHW", "NCHW")

    def conv(lhs, rhs, groups, dil, pad, st):
        return lax.conv_general_dilated(
            lhs, rhs, window_strides=(st, st), padding=[(pad, pad), (pad, pad)],
            rhs_dilation=(dil, dil), dimension_numbers=dn, feature_group_count=groups)

    zr = conv(x, wdr, C_in, dilation, padding, stride)
    zi = conv(x, wdi, C_in, dilation, padding, stride)
    yr = conv(zr, wpr, 1, 1, 0, 1) - conv(zi, wpi, 1, 1, 0, 1)
    yi = conv(zr, wpi, 1, 1, 0, 1) + conv(zi, wpr, 1, 1, 0, 1)

    axes = (0, 2, 3)
    eps = 1e-5
    mr = yr.mean(axes, keepdims=True)
    mi = yi.mean(axes, keepdims=True)
    ur, ui = yr - mr, yi - mi
    vrr = (ur * ur).mean(axes, keepdims=True) + eps
    vii = (ui * ui).mean(axes, keepdims=True) + eps
    vri = (ur * ui).mean(axes, keepdims=True)
    sqrdet = jnp.sqrt(vrr * vii - vri * vri)
    denom = sqrdet * jnp.sqrt(vrr + 2.0 * sqrdet + vii)
    p, q = (vii + sqrdet) / denom, -vri / denom
    r, s = -vri / denom, (vrr + sqrdet) / denom
    whr = ur * p + ui * r
    whi = ur * q + ui * s

    def bc(v):
        return v.reshape(1, C_out, 1, 1)

    outr = whr * bc(wbn[0]) + whi * bc(wbn[1]) + bc(bbn[0])
    outi = whr * bc(wbn[2]) + whi * bc(wbn[3]) + bc(bbn[1])
    return jnp.sqrt(outr * outr + outi * outi)


if __name__ == "__main__":
    # DARTS-style dilated-conv hyper-params: k=3, stride=1, padding=2, dilation=2
    N, C_in, C_out, H, W = 2, 4, 8, 16, 16
    kernel_size, stride, padding, dilation = 3, 1, 2, 2

    key = jax.random.PRNGKey(0)
    kx, k1, k2, k3, k4, k5, k6 = jax.random.split(key, 7)
    x = jax.random.normal(kx, (N, C_in, H, W), jnp.float32)

    wdr = 0.3 * jax.random.normal(k1, (C_in, 1, kernel_size, kernel_size), jnp.float32)
    wdi = 0.3 * jax.random.normal(k2, (C_in, 1, kernel_size, kernel_size), jnp.float32)
    wpr = 0.3 * jax.random.normal(k3, (C_out, C_in, 1, 1), jnp.float32)
    wpi = 0.3 * jax.random.normal(k4, (C_out, C_in, 1, 1), jnp.float32)
    # non-trivial BN affine (identity + noise) so the w01/w10 composition is actually checked
    wbn = (jnp.stack([jnp.ones((C_out,)), jnp.zeros((C_out,)),
                      jnp.zeros((C_out,)), jnp.ones((C_out,))], axis=0)
           + 0.1 * jax.random.normal(k5, (4, C_out), jnp.float32))
    bbn = 0.1 * jax.random.normal(k6, (2, C_out), jnp.float32)

    out = cplx_dil_conv(x, wdr, wdi, wpr, wpi, wbn, bbn,
                        kernel_size=kernel_size, stride=stride,
                        padding=padding, dilation=dilation)
    out = jax.block_until_ready(out)

    ref = reference_forward(x, wdr, wdi, wpr, wpi, wbn, bbn,
                            kernel_size=kernel_size, stride=stride,
                            padding=padding, dilation=dilation)
    assert out.shape == (N, C_out, H, W), out.shape
    err = float(jnp.max(jnp.abs(out - ref)))
    assert jnp.allclose(out, ref, rtol=2e-3, atol=2e-3), err

    print("KERNEL_OK")
</pallas_src>

<mosaic_0001>
module attributes {stable_mosaic.version = 11 : i64} {
  func.func @kernel(%arg0: i32, %arg1: i32, %arg2: i32, %arg3: memref<1x3x20x64xf32, #tpu.memory_space<vmem>>, %arg4: memref<9x64xf32, #tpu.memory_space<vmem>>, %arg5: memref<9x64xf32, #tpu.memory_space<vmem>>, %arg6: memref<64x128xf32, #tpu.memory_space<vmem>>, %arg7: memref<64x128xf32, #tpu.memory_space<vmem>>, %arg8: memref<64x128xf32, #tpu.memory_space<vmem>>, %arg9: memref<1x16x128xf32, #tpu.memory_space<vmem>>, %arg10: memref<1x16x128xf32, #tpu.memory_space<vmem>>, %arg11: memref<1x8x128xf32, #tpu.memory_space<vmem>>, %arg12: memref<8x128xf32, #tpu.memory_space<vmem>>) attributes {dimension_semantics = [#tpu.dimension_semantics<parallel>, #tpu.dimension_semantics<parallel>, #tpu.dimension_semantics<arbitrary>], iteration_bounds = array<i64: 2, 1, 1>, scalar_prefetch = 0 : i64, scratch_operands = 1 : i64, tpu.core_type = #tpu.core_type<tc>, window_params = [{transform_indices = @transform_0, window_bounds = array<i64: 1, 3, 20, 64>}, {pipeline_mode = #tpu.pipeline_mode<synchronous>, transform_indices = @transform_1, window_bounds = array<i64: 9, 64>}, {pipeline_mode = #tpu.pipeline_mode<synchronous>, transform_indices = @transform_2, window_bounds = array<i64: 9, 64>}, {pipeline_mode = #tpu.pipeline_mode<synchronous>, transform_indices = @transform_3, window_bounds = array<i64: 64, 128>}, {pipeline_mode = #tpu.pipeline_mode<synchronous>, transform_indices = @transform_4, window_bounds = array<i64: 64, 128>}, {pipeline_mode = #tpu.pipeline_mode<synchronous>, transform_indices = @transform_5, window_bounds = array<i64: 64, 128>}, {transform_indices = @transform_6, window_bounds = array<i64: 1, 16, 128>}, {transform_indices = @transform_7, window_bounds = array<i64: 1, 16, 128>}, {transform_indices = @transform_8, window_bounds = array<i64: 1, 8, 128>}]} {
    %c16_i32 = arith.constant 16 : i32
    %0 = arith.muli %arg2, %c16_i32 : i32
    %1 = tpu.assume_multiple %0, 16 : i32
    %cst = arith.constant 0.000000e+00 : f32
    %2 = vector.broadcast %cst : f32 to vector<16x64xf32>
    %cst_0 = arith.constant 0.000000e+00 : f32
    %3 = vector.broadcast %cst_0 : f32 to vector<16x64xf32>
    %c0_i32 = arith.constant 0 : i32
    %4 = arith.addi %1, %c0_i32 : i32
    %c0 = arith.constant 0 : index
    %c0_1 = arith.constant 0 : index
    %5 = arith.index_cast %4 : i32 to index
    %c0_2 = arith.constant 0 : index
    %6 = vector.load %arg3[%c0, %c0_1, %5, %c0_2] : memref<1x3x20x64xf32, #tpu.memory_space<vmem>>, vector<1x1x16x64xf32>
    %7 = vector.shape_cast %6 : vector<1x1x16x64xf32> to vector<16x64xf32>
    %c0_3 = arith.constant 0 : index
    %c0_4 = arith.constant 0 : index
    %8 = vector.load %arg4[%c0_3, %c0_4] : memref<9x64xf32, #tpu.memory_space<vmem>>, vector<1x64xf32>
    %9 = vector.broadcast %8 : vector<1x64xf32> to vector<16x64xf32>
    %10 = arith.mulf %7, %9 : vector<16x64xf32>
    %11 = arith.addf %2, %10 : vector<16x64xf32>
    %c0_5 = arith.constant 0 : index
    %c0_6 = arith.constant 0 : index
    %12 = vector.load %arg5[%c0_5, %c0_6] : memref<9x64xf32, #tpu.memory_space<vmem>>, vector<1x64xf32>
    %13 = vector.broadcast %12 : vector<1x64xf32> to vector<16x64xf32>
    %14 = arith.mulf %7, %13 : vector<16x64xf32>
    %15 = arith.addf %3, %14 : vector<16x64xf32>
    %c0_i32_7 = arith.constant 0 : i32
    %16 = arith.addi %1, %c0_i32_7 : i32
    %c0_8 = arith.constant 0 : index
    %c1 = arith.constant 1 : index
    %17 = arith.index_cast %16 : i32 to index
    %c0_9 = arith.constant 0 : index
    %18 = vector.load %arg3[%c0_8, %c1, %17, %c0_9] : memref<1x3x20x64xf32, #tpu.memory_space<vmem>>, vector<1x1x16x64xf32>
    %19 = vector.shape_cast %18 : vector<1x1x16x64xf32> to vector<16x64xf32>
    %c1_10 = arith.constant 1 : index
    %c0_11 = arith.constant 0 : index
    %20 = vector.load %arg4[%c1_10, %c0_11] : memref<9x64xf32, #tpu.memory_space<vmem>>, vector<1x64xf32>
    %21 = vector.broadcast %20 : vector<1x64xf32> to vector<16x64xf32>
    %22 = arith.mulf %19, %21 : vector<16x64xf32>
    %23 = arith.addf %11, %22 : vector<16x64xf32>
    %c1_12 = arith.constant 1 : index
    %c0_13 = arith.constant 0 : index
    %24 = vector.load %arg5[%c1_12, %c0_13] : memref<9x64xf32, #tpu.memory_space<vmem>>, vector<1x64xf32>
    %25 = vector.broadcast %24 : vector<1x64xf32> to vector<16x64xf32>
    %26 = arith.mulf %19, %25 : vector<16x64xf32>
    %27 = arith.addf %15, %26 : vector<16x64xf32>
    %c0_i32_14 = arith.constant 0 : i32
    %28 = arith.addi %1, %c0_i32_14 : i32
    %c0_15 = arith.constant 0 : index
    %c2 = arith.constant 2 : index
    %29 = arith.index_cast %28 : i32 to index
    %c0_16 = arith.constant 0 : index
    %30 = vector.load %arg3[%c0_15, %c2, %29, %c0_16] : memref<1x3x20x64xf32, #tpu.memory_space<vmem>>, vector<1x1x16x64xf32>
    %31 = vector.shape_cast %30 : vector<1x1x16x64xf32> to vector<16x64xf32>
    %c2_17 = arith.constant 2 : index
    %c0_18 = arith.constant 0 : index
    %32 = vector.load %arg4[%c2_17, %c0_18] : memref<9x64xf32, #tpu.memory_space<vmem>>, vector<1x64xf32>
    %33 = vector.broadcast %32 : vector<1x64xf32> to vector<16x64xf32>
    %34 = arith.mulf %31, %33 : vector<16x64xf32>
    %35 = arith.addf %23, %34 : vector<16x64xf32>
    %c2_19 = arith.constant 2 : index
    %c0_20 = arith.constant 0 : index
    %36 = vector.load %arg5[%c2_19, %c0_20] : memref<9x64xf32, #tpu.memory_space<vmem>>, vector<1x64xf32>
    %37 = vector.broadcast %36 : vector<1x64xf32> to vector<16x64xf32>
    %38 = arith.mulf %31, %37 : vector<16x64xf32>
    %39 = arith.addf %27, %38 : vector<16x64xf32>
    %c2_i32 = arith.constant 2 : i32
    %40 = arith.addi %1, %c2_i32 : i32
    %c0_21 = arith.constant 0 : index
    %c0_22 = arith.constant 0 : index
    %41 = arith.index_cast %40 : i32 to index
    %c0_23 = arith.constant 0 : index
    %42 = vector.load %arg3[%c0_21, %c0_22, %41, %c0_23] : memref<1x3x20x64xf32, #tpu.memory_space<vmem>>, vector<1x1x16x64xf32>
    %43 = vector.shape_cast %42 : vector<1x1x16x64xf32> to vector<16x64xf32>
    %c3 = arith.constant 3 : index
    %c0_24 = arith.constant 0 : index
    %44 = vector.load %arg4[%c3, %c0_24] : memref<9x64xf32, #tpu.memory_space<vmem>>, vector<1x64xf32>
    %45 = vector.broadcast %44 : vector<1x64xf32> to vector<16x64xf32>
    %46 = arith.mulf %43, %45 : vector<16x64xf32>
    %47 = arith.addf %35, %46 : vector<16x64xf32>
    %c3_25 = arith.constant 3 : index
    %c0_26 = arith.constant 0 : index
    %48 = vector.load %arg5[%c3_25, %c0_26] : memref<9x64xf32, #tpu.memory_space<vmem>>, vector<1x64xf32>
    %49 = vector.broadcast %48 : vector<1x64xf32> to vector<16x64xf32>
    %50 = arith.mulf %43, %49 : vector<16x64xf32>
    %51 = arith.addf %39, %50 : vector<16x64xf32>
    %c2_i32_27 = arith.constant 2 : i32
    %52 = arith.addi %1, %c2_i32_27 : i32
    %c0_28 = arith.constant 0 : index
    %c1_29 = arith.constant 1 : index
    %53 = arith.index_cast %52 : i32 to index
    %c0_30 = arith.constant 0 : index
    %54 = vector.load %arg3[%c0_28, %c1_29, %53, %c0_30] : memref<1x3x20x64xf32, #tpu.memory_space<vmem>>, vector<1x1x16x64xf32>
    %55 = vector.shape_cast %54 : vector<1x1x16x64xf32> to vector<16x64xf32>
    %c4 = arith.constant 4 : index
    %c0_31 = arith.constant 0 : index
    %56 = vector.load %arg4[%c4, %c0_31] : memref<9x64xf32, #tpu.memory_space<vmem>>, vector<1x64xf32>
    %57 = vector.broadcast %56 : vector<1x64xf32> to vector<16x64xf32>
    %58 = arith.mulf %55, %57 : vector<16x64xf32>
    %59 = arith.addf %47, %58 : vector<16x64xf32>
    %c4_32 = arith.constant 4 : index
    %c0_33 = arith.constant 0 : index
    %60 = vector.load %arg5[%c4_32, %c0_33] : memref<9x64xf32, #tpu.memory_space<vmem>>, vector<1x64xf32>
    %61 = vector.broadcast %60 : vector<1x64xf32> to vector<16x64xf32>
    %62 = arith.mulf %55, %61 : vector<16x64xf32>
    %63 = arith.addf %51, %62 : vector<16x64xf32>
    %c2_i32_34 = arith.constant 2 : i32
    %64 = arith.addi %1, %c2_i32_34 : i32
    %c0_35 = arith.constant 0 : index
    %c2_36 = arith.constant 2 : index
    %65 = arith.index_cast %64 : i32 to index
    %c0_37 = arith.constant 0 : index
    %66 = vector.load %arg3[%c0_35, %c2_36, %65, %c0_37] : memref<1x3x20x64xf32, #tpu.memory_space<vmem>>, vector<1x1x16x64xf32>
    %67 = vector.shape_cast %66 : vector<1x1x16x64xf32> to vector<16x64xf32>
    %c5 = arith.constant 5 : index
    %c0_38 = arith.constant 0 : index
    %68 = vector.load %arg4[%c5, %c0_38] : memref<9x64xf32, #tpu.memory_space<vmem>>, vector<1x64xf32>
    %69 = vector.broadcast %68 : vector<1x64xf32> to vector<16x64xf32>
    %70 = arith.mulf %67, %69 : vector<16x64xf32>
    %71 = arith.addf %59, %70 : vector<16x64xf32>
    %c5_39 = arith.constant 5 : index
    %c0_40 = arith.constant 0 : index
    %72 = vector.load %arg5[%c5_39, %c0_40] : memref<9x64xf32, #tpu.memory_space<vmem>>, vector<1x64xf32>
    %73 = vector.broadcast %72 : vector<1x64xf32> to vector<16x64xf32>
    %74 = arith.mulf %67, %73 : vector<16x64xf32>
    %75 = arith.addf %63, %74 : vector<16x64xf32>
    %c4_i32 = arith.constant 4 : i32
    %76 = arith.addi %1, %c4_i32 : i32
    %c0_41 = arith.constant 0 : index
    %c0_42 = arith.constant 0 : index
    %77 = arith.index_cast %76 : i32 to index
    %c0_43 = arith.constant 0 : index
    %78 = vector.load %arg3[%c0_41, %c0_42, %77, %c0_43] : memref<1x3x20x64xf32, #tpu.memory_space<vmem>>, vector<1x1x16x64xf32>
    %79 = vector.shape_cast %78 : vector<1x1x16x64xf32> to vector<16x64xf32>
    %c6 = arith.constant 6 : index
    %c0_44 = arith.constant 0 : index
    %80 = vector.load %arg4[%c6, %c0_44] : memref<9x64xf32, #tpu.memory_space<vmem>>, vector<1x64xf32>
    %81 = vector.broadcast %80 : vector<1x64xf32> to vector<16x64xf32>
    %82 = arith.mulf %79, %81 : vector<16x64xf32>
    %83 = arith.addf %71, %82 : vector<16x64xf32>
    %c6_45 = arith.constant 6 : index
    %c0_46 = arith.constant 0 : index
    %84 = vector.load %arg5[%c6_45, %c0_46] : memref<9x64xf32, #tpu.memory_space<vmem>>, vector<1x64xf32>
    %85 = vector.broadcast %84 : vector<1x64xf32> to vector<16x64xf32>
    %86 = arith.mulf %79, %85 : vector<16x64xf32>
    %87 = arith.addf %75, %86 : vector<16x64xf32>
    %c4_i32_47 = arith.constant 4 : i32
    %88 = arith.addi %1, %c4_i32_47 : i32
    %c0_48 = arith.constant 0 : index
    %c1_49 = arith.constant 1 : index
    %89 = arith.index_cast %88 : i32 to index
    %c0_50 = arith.constant 0 : index
    %90 = vector.load %arg3[%c0_48, %c1_49, %89, %c0_50] : memref<1x3x20x64xf32, #tpu.memory_space<vmem>>, vector<1x1x16x64xf32>
    %91 = vector.shape_cast %90 : vector<1x1x16x64xf32> to vector<16x64xf32>
    %c7 = arith.constant 7 : index
    %c0_51 = arith.constant 0 : index
    %92 = vector.load %arg4[%c7, %c0_51] : memref<9x64xf32, #tpu.memory_space<vmem>>, vector<1x64xf32>
    %93 = vector.broadcast %92 : vector<1x64xf32> to vector<16x64xf32>
    %94 = arith.mulf %91, %93 : vector<16x64xf32>
    %95 = arith.addf %83, %94 : vector<16x64xf32>
    %c7_52 = arith.constant 7 : index
    %c0_53 = arith.constant 0 : index
    %96 = vector.load %arg5[%c7_52, %c0_53] : memref<9x64xf32, #tpu.memory_space<vmem>>, vector<1x64xf32>
    %97 = vector.broadcast %96 : vector<1x64xf32> to vector<16x64xf32>
    %98 = arith.mulf %91, %97 : vector<16x64xf32>
    %99 = arith.addf %87, %98 : vector<16x64xf32>
    %c4_i32_54 = arith.constant 4 : i32
    %100 = arith.addi %1, %c4_i32_54 : i32
    %c0_55 = arith.constant 0 : index
    %c2_56 = arith.constant 2 : index
    %101 = arith.index_cast %100 : i32 to index
    %c0_57 = arith.constant 0 : index
    %102 = vector.load %arg3[%c0_55, %c2_56, %101, %c0_57] : memref<1x3x20x64xf32, #tpu.memory_space<vmem>>, vector<1x1x16x64xf32>
    %103 = vector.shape_cast %102 : vector<1x1x16x64xf32> to vector<16x64xf32>
    %c8 = arith.constant 8 : index
    %c0_58 = arith.constant 0 : index
    %104 = vector.load %arg4[%c8, %c0_58] : memref<9x64xf32, #tpu.memory_space<vmem>>, vector<1x64xf32>
    %105 = vector.broadcast %104 : vector<1x64xf32> to vector<16x64xf32>
    %106 = arith.mulf %103, %105 : vector<16x64xf32>
    %107 = arith.addf %95, %106 : vector<16x64xf32>
    %c8_59 = arith.constant 8 : index
    %c0_60 = arith.constant 0 : index
    %108 = vector.load %arg5[%c8_59, %c0_60] : memref<9x64xf32, #tpu.memory_space<vmem>>, vector<1x64xf32>
    %109 = vector.broadcast %108 : vector<1x64xf32> to vector<16x64xf32>
    %110 = arith.mulf %103, %109 : vector<16x64xf32>
    %111 = arith.addf %99, %110 : vector<16x64xf32>
    %c0_61 = arith.constant 0 : index
    %c0_62 = arith.constant 0 : index
    %112 = vector.load %arg6[%c0_61, %c0_62] : memref<64x128xf32, #tpu.memory_space<vmem>>, vector<64x128xf32>
    %cst_63 = arith.constant dense<0.000000e+00> : vector<16x128xf32>
    %113 = tpu.matmul %107, %112, %cst_63 {dimension_numbers = #tpu.dot_dimension_numbers<[1], [0], [0], [1], [0, 0, 1, 1], [], []>} : vector<16x64xf32>, vector<64x128xf32>, vector<16x128xf32> -> vector<16x128xf32>
    %c0_64 = arith.constant 0 : index
    %c0_65 = arith.constant 0 : index
    %114 = vector.load %arg7[%c0_64, %c0_65] : memref<64x128xf32, #tpu.memory_space<vmem>>, vector<64x128xf32>
    %cst_66 = arith.constant dense<0.000000e+00> : vector<16x128xf32>
    %115 = tpu.matmul %111, %114, %cst_66 {dimension_numbers = #tpu.dot_dimension_numbers<[1], [0], [0], [1], [0, 0, 1, 1], [], []>} : vector<16x64xf32>, vector<64x128xf32>, vector<16x128xf32> -> vector<16x128xf32>
    %116 = arith.addf %107, %111 : vector<16x64xf32>
    %c0_67 = arith.constant 0 : index
    %c0_68 = arith.constant 0 : index
    %117 = vector.load %arg8[%c0_67, %c0_68] : memref<64x128xf32, #tpu.memory_space<vmem>>, vector<64x128xf32>
    %cst_69 = arith.constant dense<0.000000e+00> : vector<16x128xf32>
    %118 = tpu.matmul %116, %117, %cst_69 {dimension_numbers = #tpu.dot_dimension_numbers<[1], [0], [0], [1], [0, 0, 1, 1], [], []>} : vector<16x64xf32>, vector<64x128xf32>, vector<16x128xf32> -> vector<16x128xf32>
    %119 = arith.subf %113, %115 : vector<16x128xf32>
    %120 = arith.subf %118, %113 : vector<16x128xf32>
    %121 = arith.subf %120, %115 : vector<16x128xf32>
    %c0_70 = arith.constant 0 : index
    %c0_71 = arith.constant 0 : index
    %c0_72 = arith.constant 0 : index
    %122 = vector.load %arg9[%c0_70, %c0_71, %c0_72] : memref<1x16x128xf32, #tpu.memory_space<vmem>>, vector<1x16x128xf32>
    %123 = vector.shape_cast %122 : vector<1x16x128xf32> to vector<16x128xf32>
    %124 = vector.shape_cast %119 : vector<16x128xf32> to vector<1x16x128xf32>
    tpu.vector_store %arg9[%c0_70, %c0_71, %c0_72], %124 {strides = array<i32>} : memref<1x16x128xf32, #tpu.memory_space<vmem>>, vector<1x16x128xf32>,
    %c0_73 = arith.constant 0 : index
    %c0_74 = arith.constant 0 : index
    %c0_75 = arith.constant 0 : index
    %125 = vector.load %arg10[%c0_73, %c0_74, %c0_75] : memref<1x16x128xf32, #tpu.memory_space<vmem>>, vector<1x16x128xf32>
    %126 = vector.shape_cast %125 : vector<1x16x128xf32> to vector<16x128xf32>
    %127 = vector.shape_cast %121 : vector<16x128xf32> to vector<1x16x128xf32>
    tpu.vector_store %arg10[%c0_73, %c0_74, %c0_75], %127 {strides = array<i32>} : memref<1x16x128xf32, #tpu.memory_space<vmem>>, vector<1x16x128xf32>,
    %c0_i32_76 = arith.constant 0 : i32
    %128 = arith.cmpi eq, %arg2, %c0_i32_76 : i32
    %129 = arith.extui %128 : i1 to i32
    %c0_i32_77 = arith.constant 0 : i32
    %130 = arith.cmpi ne, %129, %c0_i32_77 : i32
    scf.if %130 {
      %cst_90 = arith.constant 0.000000e+00 : f32
      %152 = vector.broadcast %cst_90 : f32 to vector<8x128xf32>
      %c0_91 = arith.constant 0 : index
      %c0_92 = arith.constant 0 : index
      %153 = vector.load %arg12[%c0_91, %c0_92] : memref<8x128xf32, #tpu.memory_space<vmem>>, vector<8x128xf32>
      tpu.vector_store %arg12[%c0_91, %c0_92], %152 {strides = array<i32>} : memref<8x128xf32, #tpu.memory_space<vmem>>, vector<8x128xf32>,
    } else {
    }
    %cst_78 = arith.constant dense<0.000000e+00> : vector<128xf32>
    %131 = vector.multi_reduction <add>, %119, %cst_78 [0] : vector<16x128xf32> to vector<128xf32>
    %132 = vector.shape_cast %131 : vector<128xf32> to vector<1x128xf32>
    %cst_79 = arith.constant dense<0.000000e+00> : vector<128xf32>
    %133 = vector.multi_reduction <add>, %121, %cst_79 [0] : vector<16x128xf32> to vector<128xf32>
    %134 = vector.shape_cast %133 : vector<128xf32> to vector<1x128xf32>
    %135 = arith.mulf %119, %119 : vector<16x128xf32>
    %cst_80 = arith.constant dense<0.000000e+00> : vector<128xf32>
    %136 = vector.multi_reduction <add>, %135, %cst_80 [0] : vector<16x128xf32> to vector<128xf32>
    %137 = vector.shape_cast %136 : vector<128xf32> to vector<1x128xf32>
    %138 = arith.mulf %121, %121 : vector<16x128xf32>
    %cst_81 = arith.constant dense<0.000000e+00> : vector<128xf32>
    %139 = vector.multi_reduction <add>, %138, %cst_81 [0] : vector<16x128xf32> to vector<128xf32>
    %140 = vector.shape_cast %139 : vector<128xf32> to vector<1x128xf32>
    %141 = arith.mulf %119, %121 : vector<16x128xf32>
    %cst_82 = arith.constant dense<0.000000e+00> : vector<128xf32>
    %142 = vector.multi_reduction <add>, %141, %cst_82 [0] : vector<16x128xf32> to vector<128xf32>
    %143 = vector.shape_cast %142 : vector<128xf32> to vector<1x128xf32>
    %cst_83 = arith.constant 0.000000e+00 : f32
    %144 = vector.broadcast %cst_83 : f32 to vector<3x128xf32>
    %145 = tpu.concatenate %132, %134, %137, %140, %143, %144 in 0 : vector<1x128xf32>, vector<1x128xf32>, vector<1x128xf32>, vector<1x128xf32>, vector<1x128xf32>, vector<3x128xf32> -> vector<8x128xf32>
    %c0_84 = arith.constant 0 : index
    %c0_85 = arith.constant 0 : index
    %146 = vector.load %arg12[%c0_84, %c0_85] : memref<8x128xf32, #tpu.memory_space<vmem>>, vector<8x128xf32>
    %147 = arith.addf %146, %145 : vector<8x128xf32>
    %c0_86 = arith.constant 0 : index
    %c0_87 = arith.constant 0 : index
    %148 = vector.load %arg12[%c0_86, %c0_87] : memref<8x128xf32, #tpu.memory_space<vmem>>, vector<8x128xf32>
    tpu.vector_store %arg12[%c0_86, %c0_87], %147 {strides = array<i32>} : memref<8x128xf32, #tpu.memory_space<vmem>>, vector<8x128xf32>,
    %c0_i32_88 = arith.constant 0 : i32
    %149 = arith.cmpi eq, %arg2, %c0_i32_88 : i32
    %150 = arith.extui %149 : i1 to i32
    %c0_i32_89 = arith.constant 0 : i32
    %151 = arith.cmpi ne, %150, %c0_i32_89 : i32
    scf.if %151 {
      %c0_90 = arith.constant 0 : index
      %c0_91 = arith.constant 0 : index
      %152 = vector.load %arg12[%c0_90, %c0_91] : memref<8x128xf32, #tpu.memory_space<vmem>>, vector<8x128xf32>
      %c0_92 = arith.constant 0 : index
      %c0_93 = arith.constant 0 : index
      %c0_94 = arith.constant 0 : index
      %153 = vector.load %arg11[%c0_92, %c0_93, %c0_94] : memref<1x8x128xf32, #tpu.memory_space<vmem>>, vector<1x8x128xf32>
      %154 = vector.shape_cast %153 : vector<1x8x128xf32> to vector<8x128xf32>
      %155 = vector.shape_cast %152 : vector<8x128xf32> to vector<1x8x128xf32>
      tpu.vector_store %arg11[%c0_92, %c0_93, %c0_94], %155 {strides = array<i32>} : memref<1x8x128xf32, #tpu.memory_space<vmem>>, vector<1x8x128xf32>,
    } else {
    }
    return
  }
  func.func @transform_0(%arg0: i32, %arg1: i32, %arg2: i32) -> (i32, i32, i32, i32) {
    %c0_i32 = arith.constant 0 : i32
    %c0_i32_0 = arith.constant 0 : i32
    %c0_i32_1 = arith.constant 0 : i32
    return %arg0, %c0_i32, %c0_i32_0, %arg1 : i32, i32, i32, i32
  }
  func.func @transform_1(%arg0: i32, %arg1: i32, %arg2: i32) -> (i32, i32) {
    %c0_i32 = arith.constant 0 : i32
    %c0_i32_0 = arith.constant 0 : i32
    %c0_i32_1 = arith.constant 0 : i32
    return %c0_i32, %c0_i32_0 : i32, i32
  }
  func.func @transform_2(%arg0: i32, %arg1: i32, %arg2: i32) -> (i32, i32) {
    %c0_i32 = arith.constant 0 : i32
    %c0_i32_0 = arith.constant 0 : i32
    %c0_i32_1 = arith.constant 0 : i32
    return %c0_i32, %c0_i32_0 : i32, i32
  }
  func.func @transform_3(%arg0: i32, %arg1: i32, %arg2: i32) -> (i32, i32) {
    %c0_i32 = arith.constant 0 : i32
    %c0_i32_0 = arith.constant 0 : i32
    %c0_i32_1 = arith.constant 0 : i32
    return %c0_i32, %c0_i32_0 : i32, i32
  }
  func.func @transform_4(%arg0: i32, %arg1: i32, %arg2: i32) -> (i32, i32) {
    %c0_i32 = arith.constant 0 : i32
    %c0_i32_0 = arith.constant 0 : i32
    %c0_i32_1 = arith.constant 0 : i32
    return %c0_i32, %c0_i32_0 : i32, i32
  }
  func.func @transform_5(%arg0: i32, %arg1: i32, %arg2: i32) -> (i32, i32) {
    %c0_i32 = arith.constant 0 : i32
    %c0_i32_0 = arith.constant 0 : i32
    %c0_i32_1 = arith.constant 0 : i32
    return %c0_i32, %c0_i32_0 : i32, i32
  }
  func.func @transform_6(%arg0: i32, %arg1: i32, %arg2: i32) -> (i32, i32, i32) {
    %c0_i32 = arith.constant 0 : i32
    return %arg0, %arg2, %arg1 : i32, i32, i32
  }
  func.func @transform_7(%arg0: i32, %arg1: i32, %arg2: i32) -> (i32, i32, i32) {
    %c0_i32 = arith.constant 0 : i32
    return %arg0, %arg2, %arg1 : i32, i32, i32
  }
  func.func @transform_8(%arg0: i32, %arg1: i32, %arg2: i32) -> (i32, i32, i32) {
    %c0_i32 = arith.constant 0 : i32
    %c0_i32_0 = arith.constant 0 : i32
    return %arg0, %c0_i32, %arg1 : i32, i32, i32
  }
}

module attributes {stable_mosaic.version = 11 : i64} {
  func.func @_whiten_abs_kernel(%arg0: i32, %arg1: memref<32x128xf32, #tpu.memory_space<vmem>>, %arg2: memref<32x128xf32, #tpu.memory_space<vmem>>, %arg3: memref<8x128xf32, #tpu.memory_space<vmem>>, %arg4: memref<32x128xf32, #tpu.memory_space<vmem>>) attributes {dimension_semantics = [#tpu.dimension_semantics<parallel>], iteration_bounds = array<i64: 1>, scalar_prefetch = 0 : i64, scratch_operands = 0 : i64, tpu.core_type = #tpu.core_type<tc>, window_params = [{transform_indices = @transform_0, window_bounds = array<i64: 32, 128>}, {transform_indices = @transform_1, window_bounds = array<i64: 32, 128>}, {pipeline_mode = #tpu.pipeline_mode<synchronous>, transform_indices = @transform_2, window_bounds = array<i64: 8, 128>}, {transform_indices = @transform_3, window_bounds = array<i64: 32, 128>}]} {
    %c0 = arith.constant 0 : index
    %c0_0 = arith.constant 0 : index
    %0 = vector.load %arg1[%c0, %c0_0] : memref<32x128xf32, #tpu.memory_space<vmem>>, vector<32x128xf32>
    %c0_1 = arith.constant 0 : index
    %c0_2 = arith.constant 0 : index
    %1 = vector.load %arg2[%c0_1, %c0_2] : memref<32x128xf32, #tpu.memory_space<vmem>>, vector<32x128xf32>
    %c0_3 = arith.constant 0 : index
    %c0_4 = arith.constant 0 : index
    %2 = vector.load %arg3[%c0_3, %c0_4] : memref<8x128xf32, #tpu.memory_space<vmem>>, vector<1x128xf32>
    %c1 = arith.constant 1 : index
    %c0_5 = arith.constant 0 : index
    %3 = vector.load %arg3[%c1, %c0_5] : memref<8x128xf32, #tpu.memory_space<vmem>>, vector<1x128xf32>
    %c2 = arith.constant 2 : index
    %c0_6 = arith.constant 0 : index
    %4 = vector.load %arg3[%c2, %c0_6] : memref<8x128xf32, #tpu.memory_space<vmem>>, vector<1x128xf32>
    %c3 = arith.constant 3 : index
    %c0_7 = arith.constant 0 : index
    %5 = vector.load %arg3[%c3, %c0_7] : memref<8x128xf32, #tpu.memory_space<vmem>>, vector<1x128xf32>
    %c4 = arith.constant 4 : index
    %c0_8 = arith.constant 0 : index
    %6 = vector.load %arg3[%c4, %c0_8] : memref<8x128xf32, #tpu.memory_space<vmem>>, vector<1x128xf32>
    %c5 = arith.constant 5 : index
    %c0_9 = arith.constant 0 : index
    %7 = vector.load %arg3[%c5, %c0_9] : memref<8x128xf32, #tpu.memory_space<vmem>>, vector<1x128xf32>
    %8 = vector.broadcast %2 : vector<1x128xf32> to vector<32x128xf32>
    %9 = arith.mulf %0, %8 : vector<32x128xf32>
    %10 = vector.broadcast %3 : vector<1x128xf32> to vector<32x128xf32>
    %11 = arith.mulf %1, %10 : vector<32x128xf32>
    %12 = arith.addf %9, %11 : vector<32x128xf32>
    %13 = vector.broadcast %6 : vector<1x128xf32> to vector<32x128xf32>
    %14 = arith.addf %12, %13 : vector<32x128xf32>
    %15 = vector.broadcast %4 : vector<1x128xf32> to vector<32x128xf32>
    %16 = arith.mulf %0, %15 : vector<32x128xf32>
    %17 = vector.broadcast %5 : vector<1x128xf32> to vector<32x128xf32>
    %18 = arith.mulf %1, %17 : vector<32x128xf32>
    %19 = arith.addf %16, %18 : vector<32x128xf32>
    %20 = vector.broadcast %7 : vector<1x128xf32> to vector<32x128xf32>
    %21 = arith.addf %19, %20 : vector<32x128xf32>
    %22 = arith.mulf %14, %14 : vector<32x128xf32>
    %23 = arith.mulf %21, %21 : vector<32x128xf32>
    %24 = arith.addf %22, %23 : vector<32x128xf32>
    %25 = math.sqrt %24 : vector<32x128xf32>
    %c0_10 = arith.constant 0 : index
    %c0_11 = arith.constant 0 : index
    %26 = vector.load %arg4[%c0_10, %c0_11] : memref<32x128xf32, #tpu.memory_space<vmem>>, vector<32x128xf32>
    tpu.vector_store %arg4[%c0_10, %c0_11], %25 {strides = array<i32>} : memref<32x128xf32, #tpu.memory_space<vmem>>, vector<32x128xf32>,
    return
  }
  func.func @transform_0(%arg0: i32) -> (i32, i32) {
    %c0_i32 = arith.constant 0 : i32
    %c0_i32_0 = arith.constant 0 : i32
    return %arg0, %c0_i32 : i32, i32
  }
  func.func @transform_1(%arg0: i32) -> (i32, i32) {
    %c0_i32 = arith.constant 0 : i32
    %c0_i32_0 = arith.constant 0 : i32
    return %arg0, %c0_i32 : i32, i32
  }
  func.func @transform_2(%arg0: i32) -> (i32, i32) {
    %c0_i32 = arith.constant 0 : i32
    %c0_i32_0 = arith.constant 0 : i32
    %c0_i32_1 = arith.constant 0 : i32
    return %c0_i32, %c0_i32_0 : i32, i32
  }
  func.func @transform_3(%arg0: i32) -> (i32, i32) {
    %c0_i32 = arith.constant 0 : i32
    %c0_i32_0 = arith.constant 0 : i32
    return %arg0, %c0_i32 : i32, i32
  }
}

</mosaic_0001>

<bundles_post_ra>
// kernel: tile.25
= control target key start
LH: loop header
LB: loop body
LE: loop exit
PB: predicated region body
PF: predicated region fallthrough
CT: control target
= control target key end

     0   :  { %vm6_vm0 = vcmask 1043458   ;;  %vm10_vm1 = vcmask 1045508   ;;  %vm14_vm2 = vcmask 1047558   ;;  %s19_s6 = smov 3  ;;  %s22_s7 = smov 12  ;;  %vm16_vm3 = vcmask 64512   ;;  %s736_s0 = inlined_call_operand.vmem [shape: f32[8,16,8], index: 0, kind: input, shape index: {}]   ;;  %s737_s1 = inlined_call_operand.vmem [shape: f32[8,128], index: 1, kind: output, shape index: {}]  }
   0x1   :  { %v348_v0 = vld [vmem:[%s736_s0 + $0xf] ss:$16 sm:%s19_s6]   ;;  %s27_s12 = smov 48  ;;  %s32_s13 = smov 192  ;;  %vm38_vm4 = vcmask 1048512   ;;  %vm60_vm5 = vcmask 982912  }
   0x2   :  { %v349_v1 = vld [vmem:[%s736_s0 + $0xf] ss:$16 sm:%s22_s7]   ;;  %s63_s18 = smov 3  ;;  %s66_s21 = smov 12  ;;  %vm82_vm6 = vcmask 917312   ;;  %vm104_vm7 = vcmask 851712  }
   0x3   :  { %v25_v2 = vsel %vm6_vm0, %v349_v1, %v348_v0  ;;  %v350_v3 = vld [vmem:[%s736_s0 + $0xf] ss:$16 sm:%s27_s12]   ;;  %v356_v6 = vld [vmem:[%s736_s0 + $0xd] ss:$16 sm:%s63_s18]   ;;  %s71_s22 = smov 48  ;;  %s76_s27 = smov 192 }
   0x4   :  { %v351_v4 = vld [vmem:[%s736_s0 + $0xf] ss:$16 sm:%s32_s13]   ;;  %v30_v5 = vsel %vm10_vm1, %v350_v3, %v25_v2  ;;  %v357_v8 = vld [vmem:[%s736_s0 + $0xd] ss:$16 sm:%s66_s21]   ;;  %s423_s28 = smov 120   ;;  %s41_s2 = smov 3 }
   0x5   :  { %v35_v7 = vsel %vm14_vm2, %v351_v4, %v30_v5  ;;  %v358_v9 = vld [vmem:[%s736_s0 + $0xd] ss:$16 sm:%s71_s22]   ;;  %v69_v10 = vsel %vm6_vm0, %v357_v8, %v356_v6  ;;  %s44_s3 = smov 12  ;;  %v352_v13 = vld [vmem:[%s736_s0 + $0xe] ss:$16 sm:%s41_s2]   ;;  %s49_s8 = smov 48 }
   0x6   :  { %36 = vrot.lane.b32.xlu0 %v35_v7, %s423_s28  ;;  %v359_v11 = vld [vmem:[%s736_s0 + $0xd] ss:$16 sm:%s76_s27]   ;;  %v74_v12 = vsel %vm10_vm1, %v358_v9, %v69_v10  ;;  %s54_s9 = smov 192  ;;  %s85_s14 = smov 3  ;;  %vm126_vm8 = vcmask 786112   ;;  %vm148_vm9 = vcmask 720512  }
   0x7   :  { %v353_v14 = vld [vmem:[%s736_s0 + $0xe] ss:$16 sm:%s44_s3]   ;;  %v79_v15 = vsel %vm14_vm2, %v359_v11, %v74_v12  ;;  %s424_s15 = smov 104   ;;  %v360_v20 = vld [vmem:[%s736_s0 + $0xc] ss:$16 sm:%s85_s14]   ;;  %s88_s18 = smov 12 }
   0x8   :  { %v47_v16 = vsel %vm6_vm0, %v353_v14, %v352_v13  ;;  %v354_v17 = vld [vmem:[%s736_s0 + $0xe] ss:$16 sm:%s49_s8]   ;;  %80 = vrot.lane.b32.xlu1 %v79_v15, %s424_s15  ;;  %s93_s19 = smov 48  ;;  %s98_s24 = smov 192  ;;  %vm170_vm10 = vcmask 654912   ;;  %vm192_vm11 = vcmask 589312  }
   0x9   :  { %v355_v18 = vld [vmem:[%s736_s0 + $0xe] ss:$16 sm:%s54_s9]   ;;  %v52_v19 = vsel %vm10_vm1, %v354_v17, %v47_v16  ;;  %v361_v22 = vld [vmem:[%s736_s0 + $0xc] ss:$16 sm:%s88_s18]   ;;  %s425_s25 = smov 112   ;;  %s107_s28 = smov 3 }
   0xa   :  { %v57_v21 = vsel %vm14_vm2, %v355_v18, %v52_v19  ;;  %v362_v23 = vld [vmem:[%s736_s0 + $0xc] ss:$16 sm:%s93_s19]   ;;  %v91_v24 = vsel %vm6_vm0, %v361_v22, %v360_v20  ;;  %s110_s29 = smov 12  ;;  %v364_v27 = vld [vmem:[%s736_s0 + $0xb] ss:$16 sm:%s107_s28]   ;;  %s115_s5 = smov 48 }
   0xb   :  { %58 = vrot.lane.b32.xlu0 %v57_v21, %s425_s25  ;;  %v363_v25 = vld [vmem:[%s736_s0 + $0xc] ss:$16 sm:%s98_s24]   ;;  %v96_v26 = vsel %vm10_vm1, %v362_v23, %v91_v24  ;;  %s120_s6 = smov 192  ;;  %s129_s11 = smov 3  ;;  %vm214_vm12 = vcmask 523712   ;;  %vm236_vm13 = vcmask 458112  }
   0xc   :  { %v365_v28 = vld [vmem:[%s736_s0 + $0xb] ss:$16 sm:%s110_s29]   ;;  %v101_v29 = vsel %vm14_vm2, %v363_v25, %v96_v26  ;;  %s426_s12 = smov 96   ;;  %v368_v34 = vld [vmem:[%s736_s0 + $0xa] ss:$16 sm:%s129_s11]   ;;  %s132_s15 = smov 12 }
   0xd   :  { %v113_v30 = vsel %vm6_vm0, %v365_v28, %v364_v27  ;;  %v366_v31 = vld [vmem:[%s736_s0 + $0xb] ss:$16 sm:%s115_s5]   ;;  %102 = vrot.lane.b32.xlu1 %v101_v29, %s426_s12  ;;  %s137_s16 = smov 48  ;;  %s142_s21 = smov 192  ;;  %vm258_vm14 = vcmask 392512   ;;  %vm280_vm15 = vcmask 326912  }
   0xe   :  { %v367_v32 = vld [vmem:[%s736_s0 + $0xb] ss:$16 sm:%s120_s6]   ;;  %v118_v33 = vsel %vm10_vm1, %v366_v31, %v113_v30  ;;  %v369_v36 = vld [vmem:[%s736_s0 + $0xa] ss:$16 sm:%s132_s15]   ;;  %s427_s22 = smov 88   ;;  %s151_s25 = smov 3 }
   0xf   :  { %v123_v35 = vsel %vm14_vm2, %v367_v32, %v118_v33  ;;  %v370_v37 = vld [vmem:[%s736_s0 + $0xa] ss:$16 sm:%s137_s16]   ;;  %v135_v38 = vsel %vm6_vm0, %v369_v36, %v368_v34  ;;  %s154_s26 = smov 12  ;;  %v372_v41 = vld [vmem:[%s736_s0 + $0x9] ss:$16 sm:%s151_s25]   ;;  %s159_s2 = smov 48 }
  0x10   :  { %124 = vrot.lane.b32.xlu0 %v123_v35, %s427_s22  ;;  %v371_v39 = vld [vmem:[%s736_s0 + $0xa] ss:$16 sm:%s142_s21]   ;;  %v140_v40 = vsel %vm10_vm1, %v370_v37, %v135_v38  ;;  %s164_s3 = smov 192  ;;  %s173_s8 = smov 3 }
  0x11   :  { %v373_v42 = vld [vmem:[%s736_s0 + $0x9] ss:$16 sm:%s154_s26]   ;;  %v145_v43 = vsel %vm14_vm2, %v371_v39, %v140_v40  ;;  %s428_s9 = smov 80   ;;  %v376_v48 = vld [vmem:[%s736_s0 + $0x8] ss:$16 sm:%s173_s8]   ;;  %s176_s12 = smov 12 }
  0x12   :  { %v157_v44 = vsel %vm6_vm0, %v373_v42, %v372_v41  ;;  %v374_v45 = vld [vmem:[%s736_s0 + $0x9] ss:$16 sm:%s159_s2]   ;;  %146 = vrot.lane.b32.xlu1 %v145_v43, %s428_s9  ;;  %s181_s13 = smov 48  ;;  %s186_s18 = smov 192 }
  0x13   :  { %v375_v46 = vld [vmem:[%s736_s0 + $0x9] ss:$16 sm:%s164_s3]   ;;  %v162_v47 = vsel %vm10_vm1, %v374_v45, %v157_v44  ;;  %v377_v50 = vld [vmem:[%s736_s0 + $0x8] ss:$16 sm:%s176_s12]   ;;  %s429_s19 = smov 72   ;;  %s195_s22 = smov 3 }
  0x14   :  { %v167_v49 = vsel %vm14_vm2, %v375_v46, %v162_v47  ;;  %v378_v51 = vld [vmem:[%s736_s0 + $0x8] ss:$16 sm:%s181_s13]   ;;  %v179_v52 = vsel %vm6_vm0, %v377_v50, %v376_v48  ;;  %s198_s23 = smov 12  ;;  %v380_v55 = vld [vmem:[%s736_s0 + $0x7] ss:$16 sm:%s195_s22]   ;;  %s203_s28 = smov 48 }
  0x15   :  { %168 = vrot.lane.b32.xlu0 %v167_v49, %s429_s19  ;;  %v379_v53 = vld [vmem:[%s736_s0 + $0x8] ss:$16 sm:%s186_s18]   ;;  %v184_v54 = vsel %vm10_vm1, %v378_v51, %v179_v52  ;;  %s208_s29 = smov 192  ;;  %s217_s5 = smov 3 }
  0x16   :  { %v381_v56 = vld [vmem:[%s736_s0 + $0x7] ss:$16 sm:%s198_s23]   ;;  %v189_v57 = vsel %vm14_vm2, %v379_v53, %v184_v54  ;;  %s430_s6 = smov 64   ;;  %v384_v62 = vld [vmem:[%s736_s0 + $0x6] ss:$16 sm:%s217_s5]   ;;  %s220_s9 = smov 12 }
  0x17   :  { %v201_v58 = vsel %vm6_vm0, %v381_v56, %v380_v55  ;;  %v382_v59 = vld [vmem:[%s736_s0 + $0x7] ss:$16 sm:%s203_s28]   ;;  %190 = vrot.lane.b32.xlu1 %v189_v57, %s430_s6  ;;  %s225_s10 = smov 48  ;;  %s230_s15 = smov 192 }
  0x18   :  { %v383_v60 = vld [vmem:[%s736_s0 + $0x7] ss:$16 sm:%s208_s29]   ;;  %v206_v61 = vsel %vm10_vm1, %v382_v59, %v201_v58  ;;  %v385_v0 = vld [vmem:[%s736_s0 + $0x6] ss:$16 sm:%s220_s9]   ;;  %s431_s16 = smov 56   ;;  %s239_s19 = smov 3 }
  0x19   :  { %v211_v63 = vsel %vm14_vm2, %v383_v60, %v206_v61  ;;  %v386_v1 = vld [vmem:[%s736_s0 + $0x6] ss:$16 sm:%s225_s10]   ;;  %v223_v2 = vsel %vm6_vm0, %v385_v0, %v384_v62  ;;  %s242_s20 = smov 12  ;;  %v388_v5 = vld [vmem:[%s736_s0 + $0x5] ss:$16 sm:%s239_s19]   ;;  %s247_s25 = smov 48 }
  0x1a   :  { %212 = vrot.lane.b32.xlu0 %v211_v63, %s431_s16  ;;  %v387_v3 = vld [vmem:[%s736_s0 + $0x6] ss:$16 sm:%s230_s15]   ;;  %v228_v4 = vsel %vm10_vm1, %v386_v1, %v223_v2  ;;  %s252_s26 = smov 192  ;;  %s261_s2 = smov 3 }
  0x1b   :  { %v389_v6 = vld [vmem:[%s736_s0 + $0x5] ss:$16 sm:%s242_s20]   ;;  %v233_v7 = vsel %vm14_vm2, %v387_v3, %v228_v4  ;;  %s432_s3 = smov 48   ;;  %v392_v12 = vld [vmem:[%s736_s0 + $0x4] ss:$16 sm:%s261_s2]   ;;  %s264_s6 = smov 12 }
  0x1c   :  { %v245_v8 = vsel %vm6_vm0, %v389_v6, %v388_v5  ;;  %v390_v9 = vld [vmem:[%s736_s0 + $0x5] ss:$16 sm:%s247_s25]   ;;  %234 = vrot.lane.b32.xlu1 %v233_v7, %s432_s3  ;;  %s269_s7 = smov 48  ;;  %s274_s12 = smov 192 }
  0x1d   :  { %v391_v10 = vld [vmem:[%s736_s0 + $0x5] ss:$16 sm:%s252_s26]   ;;  %v250_v11 = vsel %vm10_vm1, %v390_v9, %v245_v8  ;;  %v393_v14 = vld [vmem:[%s736_s0 + $0x4] ss:$16 sm:%s264_s6]   ;;  %s433_s13 = smov 40   ;;  %s283_s16 = smov 3 }
  0x1e   :  { %v255_v13 = vsel %vm14_vm2, %v391_v10, %v250_v11  ;;  %v394_v15 = vld [vmem:[%s736_s0 + $0x4] ss:$16 sm:%s269_s7]   ;;  %v267_v16 = vsel %vm6_vm0, %v393_v14, %v392_v12  ;;  %s286_s17 = smov 12  ;;  %v396_v19 = vld [vmem:[%s736_s0 + $0x3] ss:$16 sm:%s283_s16]   ;;  %s291_s22 = smov 48 }
  0x1f   :  { %256 = vrot.lane.b32.xlu0 %v255_v13, %s433_s13  ;;  %v395_v17 = vld [vmem:[%s736_s0 + $0x4] ss:$16 sm:%s274_s12]   ;;  %v272_v18 = vsel %vm10_vm1, %v394_v15, %v267_v16  ;;  %s296_s23 = smov 192  ;;  %s305_s28 = smov 3 }
  0x20   :  { %v397_v20 = vld [vmem:[%s736_s0 + $0x3] ss:$16 sm:%s286_s17]   ;;  %v277_v21 = vsel %vm14_vm2, %v395_v17, %v272_v18  ;;  %s434_s29 = smov 32   ;;  %v400_v26 = vld [vmem:[%s736_s0 + $0x2] ss:$16 sm:%s305_s28]   ;;  %s308_s3 = smov 12 }
  0x21   :  { %v289_v22 = vsel %vm6_vm0, %v397_v20, %v396_v19  ;;  %v398_v23 = vld [vmem:[%s736_s0 + $0x3] ss:$16 sm:%s291_s22]   ;;  %278 = vrot.lane.b32.xlu1 %v277_v21, %s434_s29  ;;  %s313_s4 = smov 48  ;;  %s318_s9 = smov 192 }
  0x22   :  { %v399_v24 = vld [vmem:[%s736_s0 + $0x3] ss:$16 sm:%s296_s23]   ;;  %v294_v25 = vsel %vm10_vm1, %v398_v23, %v289_v22  ;;  %v401_v28 = vld [vmem:[%s736_s0 + $0x2] ss:$16 sm:%s308_s3]   ;;  %s435_s10 = smov 24   ;;  %s327_s13 = smov 3 }
  0x23   :  { %v299_v27 = vsel %vm14_vm2, %v399_v24, %v294_v25  ;;  %v402_v29 = vld [vmem:[%s736_s0 + $0x2] ss:$16 sm:%s313_s4]   ;;  %v311_v30 = vsel %vm6_vm0, %v401_v28, %v400_v26  ;;  %s330_s14 = smov 12  ;;  %v404_v33 = vld [vmem:[%s736_s0 + $0x1] ss:$16 sm:%s327_s13]   ;;  %s335_s19 = smov 48 }
  0x24   :  { %300 = vrot.lane.b32.xlu0 %v299_v27, %s435_s10  ;;  %v403_v31 = vld [vmem:[%s736_s0 + $0x2] ss:$16 sm:%s318_s9]   ;;  %v316_v32 = vsel %vm10_vm1, %v402_v29, %v311_v30  ;;  %s340_s20 = smov 192  ;;  %s2_s25 = smov 3 }
  0x25   :  { %v405_v34 = vld [vmem:[%s736_s0 + $0x1] ss:$16 sm:%s330_s14]   ;;  %v321_v35 = vsel %vm14_vm2, %v403_v31, %v316_v32  ;;  %s436_s26 = smov 16   ;;  %s4_s27 = smov 12  ;;  %v3_v40 = vld [vmem:[%s736_s0] ss:$16 sm:%s2_s25]  }
  0x26   :  { %v333_v36 = vsel %vm6_vm0, %v405_v34, %v404_v33  ;;  %v406_v37 = vld [vmem:[%s736_s0 + $0x1] ss:$16 sm:%s335_s19]   ;;  %322 = vrot.lane.b32.xlu1 %v321_v35, %s436_s26  ;;  %s8_s28 = smov 48  ;;  %s12_s2 = smov 192 }
  0x27   :  { %v407_v38 = vld [vmem:[%s736_s0 + $0x1] ss:$16 sm:%s340_s20]   ;;  %v338_v39 = vsel %vm10_vm1, %v406_v37, %v333_v36  ;;  %v5_v42 = vld [vmem:[%s736_s0] ss:$16 sm:%s4_s27]   ;;  %s437_s7 = smov 8  }
  0x28   :  { %v343_v41 = vsel %vm14_vm2, %v407_v38, %v338_v39  ;;  %v9_v43 = vld [vmem:[%s736_s0] ss:$16 sm:%s8_s28]   ;;  %v7_v44 = vsel %vm6_vm0, %v5_v42, %v3_v40  ;;  %vm302_vm0 = vcmask 261312  }
  0x29   :  { %344 = vrot.lane.b32.xlu0 %v343_v41, %s437_s7  ;;  %v13_v45 = vld [vmem:[%s736_s0] ss:$16 sm:%s12_s2]   ;;  %v11_v46 = vsel %vm10_vm1, %v9_v43, %v7_v44  ;;  %vm324_vm1 = vcmask 195712  }
  0x2a   :  { %v15_v47 = vsel %vm14_vm2, %v13_v45, %v11_v46  ;;  %vm346_vm2 = vcmask 130112  }
  0x2b   :  { %17 = vst.msk [vmem:[%s737_s1] sm:$0xff] %vm16_vm3, %v15_v47  }
  0x78   :  { %v37_v48 = vpop.permute.xlu0 %36  }
  0x79   :  { %39 = vst.msk [vmem:[%s737_s1] sm:$0xff] %vm38_vm4, %v37_v48  }
  0x7a   :  { %v81_v49 = vpop.permute.xlu1 %80  }
  0x7d   :  { %v59_v50 = vpop.permute.xlu0 %58  }
  0x7e   :  { %61 = vst.msk [vmem:[%s737_s1] sm:$0xff] %vm60_vm5, %v59_v50  }
  0x7f   :  { %83 = vst.msk [vmem:[%s737_s1] sm:$0xff] %vm82_vm6, %v81_v49   ;;  %v103_v51 = vpop.permute.xlu1 %102  }
  0x80   :  { %105 = vst.msk [vmem:[%s737_s1] sm:$0xff] %vm104_vm7, %v103_v51  }
  0x82   :  { %v125_v52 = vpop.permute.xlu0 %124  }
  0x83   :  { %127 = vst.msk [vmem:[%s737_s1] sm:$0xff] %vm126_vm8, %v125_v52  }
  0x84   :  { %v147_v53 = vpop.permute.xlu1 %146  }
  0x85   :  { %149 = vst.msk [vmem:[%s737_s1] sm:$0xff] %vm148_vm9, %v147_v53  }
  0x87   :  { %v169_v54 = vpop.permute.xlu0 %168  }
  0x88   :  { %171 = vst.msk [vmem:[%s737_s1] sm:$0xff] %vm170_vm10, %v169_v54  }
  0x89   :  { %v191_v55 = vpop.permute.xlu1 %190  }
  0x8a   :  { %193 = vst.msk [vmem:[%s737_s1] sm:$0xff] %vm192_vm11, %v191_v55  }
  0x8c   :  { %v213_v56 = vpop.permute.xlu0 %212  }
  0x8d   :  { %215 = vst.msk [vmem:[%s737_s1] sm:$0xff] %vm214_vm12, %v213_v56  }
  0x8e   :  { %v235_v57 = vpop.permute.xlu1 %234  }
  0x8f   :  { %237 = vst.msk [vmem:[%s737_s1] sm:$0xff] %vm236_vm13, %v235_v57  }
  0x91   :  { %v257_v58 = vpop.permute.xlu0 %256  }
  0x92   :  { %259 = vst.msk [vmem:[%s737_s1] sm:$0xff] %vm258_vm14, %v257_v58  }
  0x93   :  { %v279_v59 = vpop.permute.xlu1 %278  }
  0x94   :  { %281 = vst.msk [vmem:[%s737_s1] sm:$0xff] %vm280_vm15, %v279_v59  }
  0x96   :  { %v301_v60 = vpop.permute.xlu0 %300  }
  0x97   :  { %303 = vst.msk [vmem:[%s737_s1] sm:$0xff] %vm302_vm0, %v301_v60  }
  0x98   :  { %v323_v61 = vpop.permute.xlu1 %322  }
  0x99   :  { %325 = vst.msk [vmem:[%s737_s1] sm:$0xff] %vm324_vm1, %v323_v61  }
  0x9b   :  { %v345_v62 = vpop.permute.xlu0 %344  }
  0x9c   :  { %347 = vst.msk [vmem:[%s737_s1] sm:$0xff] %vm346_vm2, %v345_v62  }

// kernel: cplx_dil_conv.3
= control target key start
LH: loop header
LB: loop body
LE: loop exit
PB: predicated region body
PF: predicated region fallthrough
CT: control target
= control target key end

     0   :  { %s220_s0 = inlined_call_operand.vmem [shape: f32[32,128], index: 0, kind: input, shape index: {}]   ;;  %s221_s1 = inlined_call_operand.vmem [shape: f32[32,128], index: 1, kind: input, shape index: {}]   ;;  %s222_s2 = inlined_call_operand.vmem [shape: f32[8,128], index: 2, kind: input, shape index: {}]   ;;  %s223_s3 = inlined_call_operand.vmem [shape: f32[32,128], index: 3, kind: output, shape index: {}]  }
   0x1   :  { %v14_v0 = vld [vmem:[%s220_s0] sm:$0xff]  ;;  %v15_v12 = vld [vmem:[%s220_s0 + $0x8] sm:$0xff]  ;;  %v16_v16 = vld [vmem:[%s220_s0 + $0x10] sm:$0xff] }
   0x2   :  { %v18_v1 = vld [vmem:[%s221_s1] sm:$0xff]  ;;  %v19_v13 = vld [vmem:[%s221_s1 + $0x8] sm:$0xff]  ;;  %v20_v17 = vld [vmem:[%s221_s1 + $0x10] sm:$0xff] }
   0x3   :  { %v132_v2 = vld [vmem:[%s222_s2] ss:$0 sm:$0xff]  ;;  %v133_v3 = vld [vmem:[%s222_s2 + $0x1] ss:$0 sm:$0xff]  ;;  %v135_v4 = vld [vmem:[%s222_s2 + $0x2] ss:$0 sm:$0xff] }
   0x4   :  { %v136_v5 = vld [vmem:[%s222_s2 + $0x3] ss:$0 sm:$0xff]  ;;  %v32_v6 = vmul.f32 %v132_v2, %v14_v0  ;;  %v134_v7 = vld [vmem:[%s222_s2 + $0x4] ss:$0 sm:$0xff]  ;;  %v137_v8 = vld [vmem:[%s222_s2 + $0x5] ss:$0 sm:$0xff]  ;;  %v40_v9 = vmul.f32 %v133_v3, %v18_v1  ;;  %v60_v10 = vmul.f32 %v135_v4, %v14_v0  ;;  %v33_v14 = vmul.f32 %v132_v2, %v15_v12 }
   0x5   :  { %v68_v11 = vmul.f32 %v136_v5, %v18_v1  ;;  %v61_v15 = vmul.f32 %v135_v4, %v15_v12  ;;  %v41_v20 = vmul.f32 %v133_v3, %v19_v13  ;;  %v69_v21 = vmul.f32 %v136_v5, %v19_v13  ;;  %v17_v22 = vld [vmem:[%s220_s0 + $0x18] sm:$0xff] }
   0x6   :  { %v44_v18 = vadd.f32 %v40_v9, %v32_v6  ;;  %v21_v23 = vld [vmem:[%s221_s1 + $0x18] sm:$0xff]  ;;  %v34_v24 = vmul.f32 %v132_v2, %v16_v16  ;;  %v42_v25 = vmul.f32 %v133_v3, %v20_v17  ;;  %v62_v26 = vmul.f32 %v135_v4, %v16_v16 }
   0x7   :  { %v72_v19 = vadd.f32 %v68_v11, %v60_v10  ;;  %v70_v27 = vmul.f32 %v136_v5, %v20_v17  ;;  %v45_v30 = vadd.f32 %v41_v20, %v33_v14  ;;  %v73_v31 = vadd.f32 %v69_v21, %v61_v15 }
   0x8   :  { %v52_v28 = vadd.f32 %v134_v7, %v44_v18  ;;  %v46_v32 = vadd.f32 %v42_v25, %v34_v24  ;;  %v35_v34 = vmul.f32 %v132_v2, %v17_v22  ;;  %v43_v35 = vmul.f32 %v133_v3, %v21_v23 }
   0x9   :  { %v80_v29 = vadd.f32 %v137_v8, %v72_v19  ;;  %v74_v33 = vadd.f32 %v70_v27, %v62_v26  ;;  %v53_v38 = vadd.f32 %v134_v7, %v45_v30  ;;  %v81_v39 = vadd.f32 %v137_v8, %v73_v31 }
   0xa   :  { %v84_v36 = vmul.f32 %v52_v28, %v52_v28  ;;  %v54_v40 = vadd.f32 %v134_v7, %v46_v32  ;;  %v47_v42 = vadd.f32 %v43_v35, %v35_v34  ;;  %v63_v43 = vmul.f32 %v135_v4, %v17_v22 }
   0xb   :  { %v88_v37 = vmul.f32 %v80_v29, %v80_v29  ;;  %v82_v41 = vadd.f32 %v137_v8, %v74_v33  ;;  %v85_v45 = vmul.f32 %v53_v38, %v53_v38  ;;  %v89_v46 = vmul.f32 %v81_v39, %v81_v39 }
   0xc   :  { %v71_v47 = vmul.f32 %v136_v5, %v21_v23  ;;  %v86_v48 = vmul.f32 %v54_v40, %v54_v40  ;;  %v55_v52 = vadd.f32 %v134_v7, %v47_v42 }
   0xd   :  { %v92_v44 = vadd.f32 %v88_v37, %v84_v36  ;;  %v90_v49 = vmul.f32 %v82_v41, %v82_v41  ;;  %v93_v50 = vadd.f32 %v89_v46, %v85_v45 }
   0xe   :  { %v75_v53 = vadd.f32 %v71_v47, %v63_v43  ;;  %v87_v55 = vmul.f32 %v55_v52, %v55_v52 }
   0xf   :  { %138 = vrsqrt.f32 %v92_v44  ;;  %v94_v51 = vadd.f32 %v90_v49, %v86_v48  ;;  %vm98_vm0 = vcmp.eq.f32.partialorder %v92_v44, inf  ;;  %v101_v59 = vand.u32 2147483648, %v92_v44 }
  0x10   :  { %140 = vrsqrt.f32 %v93_v50  ;;  %v83_v54 = vadd.f32 %v137_v8, %v75_v53  ;;  %vm100_vm1 = vcmp.eq.f32.partialorder %v92_v44, 0.0  ;;  %vm105_vm2 = vcmp.eq.f32.partialorder %v93_v50, inf }
  0x11   :  { %142 = vrsqrt.f32 %v94_v51  ;;  %vm107_vm3 = vcmp.eq.f32.partialorder %v93_v50, 0.0  ;;  %v108_v63 = vand.u32 2147483648, %v93_v50  ;;  %vm112_vm4 = vcmp.eq.f32.partialorder %v94_v51, inf }
  0x12   :  { %v91_v56 = vmul.f32 %v83_v54, %v83_v54  ;;  %v115_v3 = vand.u32 2147483648, %v94_v51  ;;  %vm114_vm5 = vcmp.eq.f32.partialorder %v94_v51, 0.0 }
  0x14   :  { %v95_v57 = vadd.f32 %v91_v56, %v87_v55 }
  0x16   :  { %144 = vrsqrt.f32 %v95_v57  ;;  %vm119_vm6 = vcmp.eq.f32.partialorder %v95_v57, inf  ;;  %v122_v10 = vand.u32 2147483648, %v95_v57  ;;  %vm121_vm7 = vcmp.eq.f32.partialorder %v95_v57, 0.0 }
  0x1c   :  { %v139_v58 = vpop.eup %138 }
  0x1d   :  { %v97_v60 = vmul.f32 %v139_v58, %v92_v44  ;;  %v141_v61 = vpop.eup %140 }
  0x1e   :  { %v143_v0 = vpop.eup %142  ;;  %v104_v2 = vmul.f32 %v141_v61, %v93_v50 }
  0x1f   :  { %v99_v62 = vsel %vm98_vm0, %v92_v44, %v97_v60  ;;  %v111_v4 = vmul.f32 %v143_v0, %v94_v51 }
  0x20   :  { %v102_v1 = vsel %vm100_vm1, %v101_v59, %v99_v62  ;;  %v106_v5 = vsel %vm105_vm2, %v93_v50, %v104_v2 }
  0x21   :  { %124 = vst [vmem:[%s223_s3] sm:$0xff] %v102_v1  ;;  %v109_v6 = vsel %vm107_vm3, %v108_v63, %v106_v5  ;;  %v113_v7 = vsel %vm112_vm4, %v94_v51, %v111_v4 }
  0x22   :  { %125 = vst [vmem:[%s223_s3 + $0x8] sm:$0xff] %v109_v6  ;;  %v116_v8 = vsel %vm114_vm5, %v115_v3, %v113_v7 }
  0x23   :  { %126 = vst [vmem:[%s223_s3 + $0x10] sm:$0xff] %v116_v8  ;;  %v145_v9 = vpop.eup %144 }
  0x24   :  { %v118_v11 = vmul.f32 %v145_v9, %v95_v57 }
  0x26   :  { %v120_v12 = vsel %vm119_vm6, %v95_v57, %v118_v11 }
  0x27   :  { %v123_v13 = vsel %vm121_vm7, %v122_v10, %v120_v12 }
  0x28   :  { %127 = vst [vmem:[%s223_s3 + $0x18] sm:$0xff] %v123_v13 }

// kernel: cplx_dil_conv.2
= control target key start
LH: loop header
LB: loop body
LE: loop exit
PB: predicated region body
PF: predicated region fallthrough
CT: control target
= control target key end

     0   :  { %s1410_s27 = smov 0   ;;  %s1412_s28 = smov 0   ;;  %s1626_s0 = inlined_call_operand.vmem [shape: f32[2,3,20,64], index: 0, kind: input, shape index: {}]   ;;  %s1627_s1 = inlined_call_operand.vmem [shape: f32[9,64], index: 1, kind: input, shape index: {}]   ;;  %s1628_s2 = inlined_call_operand.vmem [shape: f32[9,64], index: 2, kind: input, shape index: {}]   ;;  %s1629_s3 = inlined_call_operand.vmem [shape: f32[64,128], index: 3, kind: input, shape index: {}]   ;;  %s1630_s4 = inlined_call_operand.vmem [shape: f32[64,128], index: 4, kind: input, shape index: {}]   ;;  %s1631_s5 = inlined_call_operand.vmem [shape: f32[64,128], index: 5, kind: input, shape index: {}]   ;;  %s1632_s6 = inlined_call_operand.vmem [shape: f32[2,16,128], index: 6, kind: output, shape index: {0}]   ;;  %s1633_s7 = inlined_call_operand.vmem [shape: f32[2,16,128], index: 7, kind: output, shape index: {1}]   ;;  %s1634_s8 = inlined_call_operand.vmem [shape: f32[2,8,128], index: 8, kind: output, shape index: {2}]  }
   0x1   :  { %s1414_s29 = smov 0  }
   0x2 LB: > { %s38_s30 = sadd.s32 1, %s1359_s28  ;;  %p1178_p0 = scmp.ge.s32.totalorder %s1363_s29, 1  ;;  %s1363_s29 = sphi %s1414_s29, %s19_s29   ;;  %s1359_s28 = sphi %s1412_s28, %s1636_s28   ;;  %s1355_s27 = sphi %s1410_s27, %s1635_s27  }
   0x3   : > { %p40_p1 = scmp.ge.s32.totalorder %s38_s30, 2  ;;  %p301_p2 = scmp.lt.s32.totalorder %s1363_s29, 3 }
   0x5   : > { %s1638_s30 = smov (%p40_p1, %s38_s30), 0  ;;  %p302_p3 = pnand %p1178_p0, %p301_p2 }
   0x6   : > { %p364_p4 = scmp.lt.s32.totalorder (!%p302_p3), %s1355_s27, 1 }
   0x7   : > { %305 = sbr.rel (%p302_p3) target bundleno = 278 (0x116), region = 44 }
   0xc   : > { %v610_v0 = vld [vmem:[%s1629_s3 + $0x38] sm:$0xff]  ;;  %v609_v2 = vld [vmem:[%s1629_s3 + $0x30] sm:$0xff]  ;;  %v608_v4 = vld [vmem:[%s1629_s3 + $0x28] sm:$0xff]  ;;  %s1640_s27 = smov (!%p364_p4, %s1355_s27), 1  ;;  %vm611_vm0 = vcmask 523264   ;;  %vm929_vm1 = vcmask 1040384  }
   0xd   : > { %v700_v1 = vld [vmem:[%s1630_s4 + $0x38] sm:$0xff]  ;;  %1259 = vmatprep.subr.mxu0 %v610_v0  ;;  %v699_v3 = vld [vmem:[%s1630_s4 + $0x30] sm:$0xff]  ;;  %v698_v5 = vld [vmem:[%s1630_s4 + $0x28] sm:$0xff]  ;;  %s1316_s9 = smul.u32 72, %s1640_s27  ;;  %vm931_vm2 = vcmask 1041408   ;;  %s1184_s15 = sshll.u32 %s1640_s27, 3 }
   0xe   : > { %1278 = vmatprep.subr.mxu1 %v700_v1  ;;  %1260 = vmatpush3.msra.mxu0 %v610_v0  ;;  %v607_v6 = vld [vmem:[%s1629_s3 + $0x20] sm:$0xff]  ;;  %v606_v8 = vld [vmem:[%s1629_s3 + $0x18] sm:$0xff]  ;;  %v605_v12 = vld [vmem:[%s1629_s3 + $0x10] sm:$0xff]  ;;  %vm933_vm3 = vcmask 1042432   ;;  %vm935_vm4 = vcmask 1043456   ;;  %vm937_vm5 = vcmask 1044480   ;;  %s404_s18 = scalar_lea.vmem %s1634_s8, %s1184_s15 }
   0xf   : > { %1279 = vmatpush3.msra.mxu1 %v700_v1  ;;  %1261 = vmatprep.subr.mxu0 %v609_v2  ;;  %v697_v7 = vld [vmem:[%s1630_s4 + $0x20] sm:$0xff]  ;;  %v696_v9 = vld [vmem:[%s1630_s4 + $0x18] sm:$0xff]  ;;  %s1473_s20 = scalar_lea.vmem %s1626_s0, %s1316_s9  ;;  %v695_v18 = vld [vmem:[%s1630_s4 + $0x10] sm:$0xff]  ;;  %s1227_s9 = sshll.u32 %s1640_s27, 4 }
  0x10   : > { %1280 = vmatprep.subr.mxu1 %v699_v3  ;;  %1262 = vmatpush3.msra.mxu0 %v609_v2  ;;  %v1185_v10 = vld [vmem:[%s1627_s1] ss:$0 sm:$0xff]  ;;  %v1189_v11 = vld [vmem:[%s1627_s1 + $0x1] ss:$0 sm:$0xff]  ;;  %v1193_v13 = vld [vmem:[%s1627_s1 + $0x2] ss:$0 sm:$0xff]  ;;  %s383_s12 = scalar_lea.vmem %s1632_s6, %s1227_s9  ;;  %s396_s14 = scalar_lea.vmem %s1633_s7, %s1227_s9 }
  0x11   : > { %1281 = vmatpush3.msra.mxu1 %v699_v3  ;;  %1263 = vmatprep.subr.mxu0 %v608_v4  ;;  %v1197_v14 = vld [vmem:[%s1627_s1 + $0x3] ss:$0 sm:$0xff]  ;;  %v1483_v16 = vld [vmem:[%s1473_s20 + $0x8] sm:$0xff]  ;;  %v1187_v17 = vld [vmem:[%s1473_s20 + $0x18] sm:$0xff] }
  0x12   : > { %1282 = vmatprep.subr.mxu1 %v698_v5  ;;  %1264 = vmatpush3.msra.mxu0 %v608_v4  ;;  %v407_v15 = vld [vmem:[%s1473_s20] sm:$0xff]  ;;  %v436_v21 = vmul.f32 %v1189_v11, %v1187_v17  ;;  %v1191_v22 = vld [vmem:[%s1473_s20 + $0x30] sm:$0xff]  ;;  %v415_v23 = vmul.f32 %v1185_v10, %v1483_v16  ;;  %v604_v29 = vld [vmem:[%s1629_s3 + $0x8] sm:$0xff] }
  0x13   : > { %1283 = vmatpush3.msra.mxu1 %v698_v5  ;;  %1265 = vmatprep.subr.mxu0 %v607_v6  ;;  %v414_v19 = vmul.f32 %v1185_v10, %v407_v15  ;;  %v1490_v20 = vld [vmem:[%s1473_s20 + $0x20] sm:$0xff]  ;;  %v458_v25 = vmul.f32 %v1193_v13, %v1191_v22  ;;  %v694_v30 = vld [vmem:[%s1630_s4 + $0x8] sm:$0xff]  ;;  %v1192_v32 = vld [vmem:[%s1473_s20 + $0x38] sm:$0xff] }
  0x14   : > { %1284 = vmatprep.subr.mxu1 %v697_v7  ;;  %1266 = vmatpush3.msra.mxu0 %v607_v6  ;;  %v437_v24 = vmul.f32 %v1189_v11, %v1490_v20  ;;  %v1195_v26 = vld [vmem:[%s1473_s20 + $0x2] sm:$0xff]  ;;  %v1497_v27 = vld [vmem:[%s1473_s20 + $0x1a] sm:$0xff]  ;;  %v1510_v34 = vld [vmem:[%s1473_s20 + $0x32] sm:$0xff]  ;;  %v459_v41 = vmul.f32 %v1193_v13, %v1192_v32 }
  0x15   : > { %1285 = vmatpush3.msra.mxu1 %v697_v7  ;;  %1267 = vmatprep.subr.mxu0 %v606_v8  ;;  %v1201_v28 = vld [vmem:[%s1627_s1 + $0x4] ss:$0 sm:$0xff]  ;;  %v438_v31 = vadd.f32 %v436_v21, %v414_v19  ;;  %v480_v33 = vmul.f32 %v1197_v14, %v1195_v26  ;;  %v1205_v35 = vld [vmem:[%s1627_s1 + $0x5] ss:$0 sm:$0xff]  ;;  %v1196_v39 = vld [vmem:[%s1473_s20 + $0xa] sm:$0xff] }
  0x16   : > { %1286 = vmatprep.subr.mxu1 %v696_v9  ;;  %1268 = vmatpush3.msra.mxu0 %v606_v8  ;;  %v603_v36 = vld [vmem:[%s1629_s3] sm:$0xff]  ;;  %v502_v40 = vmul.f32 %v1201_v28, %v1497_v27  ;;  %v439_v45 = vadd.f32 %v437_v24, %v415_v23  ;;  %v524_v47 = vmul.f32 %v1205_v35, %v1510_v34  ;;  %v1215_v58 = vld [vmem:[%s1473_s20 + $0x34] sm:$0xff]  ;;  %v1217_v59 = vld [vmem:[%s1627_s1 + $0x8] ss:$0 sm:$0xff] }
  0x17   : > { %1287 = vmatpush3.msra.mxu1 %v696_v9  ;;  %1269 = vmatprep.subr.mxu0 %v605_v12  ;;  %v693_v37 = vld [vmem:[%s1630_s4] sm:$0xff]  ;;  %v460_v38 = vadd.f32 %v458_v25, %v438_v31  ;;  %v481_v51 = vmul.f32 %v1197_v14, %v1196_v39  ;;  %v791_v1 = vld [vmem:[%s1631_s5 + $0x38] sm:$0xff]  ;;  %v590_v9 = vmul.f32 %v1217_v59, %v1215_v58  ;;  %v1208_v11 = vld [vmem:[%s1473_s20 + $0xc] sm:$0xff] }
  0x18   : > { %1288 = vmatprep.subr.mxu1 %v695_v18  ;;  %1270 = vmatpush3.msra.mxu0 %v605_v12  ;;  %v1207_v42 = vld [vmem:[%s1473_s20 + $0x4] sm:$0xff]  ;;  %v1528_v44 = vld [vmem:[%s1473_s20 + $0x1c] sm:$0xff]  ;;  %v461_v2 = vadd.f32 %v459_v41, %v439_v45 }
  0x19   : > { %1289 = vmatpush3.msra.mxu1 %v695_v18  ;;  %1271 = vmatprep.subr.mxu0 %v604_v29  ;;  %v1209_v43 = vld [vmem:[%s1627_s1 + $0x6] ss:$0 sm:$0xff]  ;;  %v482_v46 = vadd.f32 %v480_v33, %v460_v38  ;;  %v1213_v48 = vld [vmem:[%s1627_s1 + $0x7] ss:$0 sm:$0xff]  ;;  %v1186_v49 = vld [vmem:[%s1628_s2] ss:$0 sm:$0xff] }
  0x1a   : > { %1290 = vmatprep.subr.mxu1 %v694_v30  ;;  %1272 = vmatpush3.msra.mxu0 %v604_v29  ;;  %v1190_v50 = vld [vmem:[%s1628_s2 + $0x1] ss:$0 sm:$0xff]  ;;  %v423_v52 = vmul.f32 %v1186_v49, %v407_v15  ;;  %v1194_v53 = vld [vmem:[%s1628_s2 + $0x2] ss:$0 sm:$0xff]  ;;  %v1198_v54 = vld [vmem:[%s1628_s2 + $0x3] ss:$0 sm:$0xff]  ;;  %v546_v57 = vmul.f32 %v1209_v43, %v1207_v42  ;;  %v568_v61 = vmul.f32 %v1213_v48, %v1528_v44 }
  0x1b   : > { %1291 = vmatpush3.msra.mxu1 %v694_v30  ;;  %1273 = vmatprep.subr.mxu0 %v603_v36  ;;  %v1200_v55 = vld [vmem:[%s1473_s20 + $0x22] sm:$0xff]  ;;  %v504_v56 = vadd.f32 %v502_v40, %v482_v46  ;;  %v445_v60 = vmul.f32 %v1190_v50, %v1187_v17  ;;  %v424_v62 = vmul.f32 %v1186_v49, %v1483_v16  ;;  %v1204_v3 = vld [vmem:[%s1473_s20 + $0x3a] sm:$0xff] }
  0x1c   : > { %1292 = vmatprep.subr.mxu1 %v693_v37  ;;  %1274 = vmatpush3.msra.mxu0 %v603_v36  ;;  %v467_v63 = vmul.f32 %v1194_v53, %v1191_v22  ;;  %v1202_v0 = vld [vmem:[%s1628_s2 + $0x4] ss:$0 sm:$0xff]  ;;  %v446_v5 = vmul.f32 %v1190_v50, %v1490_v20  ;;  %v489_v7 = vmul.f32 %v1198_v54, %v1195_v26  ;;  %v1206_v10 = vld [vmem:[%s1628_s2 + $0x5] ss:$0 sm:$0xff]  ;;  %v1210_v18 = vld [vmem:[%s1628_s2 + $0x6] ss:$0 sm:$0xff] }
  0x1d   : > { %1293 = vmatpush3.msra.mxu1 %v693_v37  ;;  %v526_v4 = vadd.f32 %v524_v47, %v504_v56  ;;  %v447_v6 = vadd.f32 %v445_v60, %v423_v52  ;;  %1297 = vmatprep.subr.mxu0 %v791_v1  ;;  %v503_v8 = vmul.f32 %v1201_v28, %v1200_v55  ;;  %v1212_v20 = vld [vmem:[%s1473_s20 + $0x24] sm:$0xff]  ;;  %v1216_v29 = vld [vmem:[%s1473_s20 + $0x3c] sm:$0xff]  ;;  %v790_v56 = vld [vmem:[%s1631_s5 + $0x30] sm:$0xff] }
  0x1e   : > { %v468_v13 = vmul.f32 %v1194_v53, %v1192_v32  ;;  %v511_v15 = vmul.f32 %v1202_v0, %v1497_v27  ;;  %v525_v16 = vmul.f32 %v1205_v35, %v1204_v3  ;;  %v490_v17 = vmul.f32 %v1198_v54, %v1196_v39  ;;  %v1214_v27 = vld [vmem:[%s1628_s2 + $0x7] ss:$0 sm:$0xff]  ;;  %v1218_v36 = vld [vmem:[%s1628_s2 + $0x8] ss:$0 sm:$0xff] }
  0x1f   : > { %v548_v12 = vadd.f32 %v546_v57, %v526_v4  ;;  %v469_v14 = vadd.f32 %v467_v63, %v447_v6  ;;  %v483_v19 = vadd.f32 %v481_v51, %v461_v2  ;;  %v533_v23 = vmul.f32 %v1206_v10, %v1510_v34  ;;  %v788_v60 = vld [vmem:[%s1631_s5 + $0x20] sm:$0xff]  ;;  %v785_v63 = vld [vmem:[%s1631_s5 + $0x8] sm:$0xff] }
  0x20   : > { %v448_v24 = vadd.f32 %v446_v5, %v424_v62  ;;  %v547_v25 = vmul.f32 %v1209_v43, %v1208_v11  ;;  %v512_v26 = vmul.f32 %v1202_v0, %v1200_v55  ;;  %v555_v32 = vmul.f32 %v1210_v18, %v1207_v42  ;;  %v786_v62 = vld [vmem:[%s1631_s5 + $0x10] sm:$0xff]  ;;  %v784_v0 = vld [vmem:[%s1631_s5] sm:$0xff] }
  0x21   : > { %v570_v21 = vadd.f32 %v568_v61, %v548_v12  ;;  %v491_v22 = vadd.f32 %v489_v7, %v469_v14  ;;  %v505_v28 = vadd.f32 %v503_v8, %v483_v19  ;;  %v569_v35 = vmul.f32 %v1213_v48, %v1212_v20  ;;  %v787_v61 = vld [vmem:[%s1631_s5 + $0x18] sm:$0xff] }
  0x22   : > { %v470_v33 = vadd.f32 %v468_v13, %v448_v24  ;;  %v534_v37 = vmul.f32 %v1206_v10, %v1204_v3  ;;  %v577_v39 = vmul.f32 %v1214_v27, %v1528_v44  ;;  %v591_v41 = vmul.f32 %v1217_v59, %v1216_v29 }
  0x23   : > { %v592_v30 = vadd.f32 %v590_v9, %v570_v21  ;;  %v513_v31 = vadd.f32 %v511_v15, %v491_v22  ;;  %v527_v34 = vadd.f32 %v525_v16, %v505_v28  ;;  %v556_v45 = vmul.f32 %v1210_v18, %v1208_v11 }
  0x24   : > { %v492_v40 = vadd.f32 %v490_v17, %v470_v33  ;;  %v599_v47 = vmul.f32 %v1218_v36, %v1215_v58  ;;  %v578_v48 = vmul.f32 %v1214_v27, %v1212_v20  ;;  %v600_v53 = vmul.f32 %v1218_v36, %v1216_v29  ;;  %v789_v58 = vld [vmem:[%s1631_s5 + $0x28] sm:$0xff] }
  0x25   : > { %1275 = vmatprep.mubr.msk.f32.mxu0 %vm611_vm0, %v592_v30  ;;  %v535_v38 = vadd.f32 %v533_v23, %v513_v31  ;;  %v549_v43 = vadd.f32 %v547_v25, %v527_v34 }
  0x26   : > { %v514_v42 = vadd.f32 %v512_v26, %v492_v40 }
  0x27   : > { %v557_v46 = vadd.f32 %v555_v32, %v535_v38  ;;  %v571_v49 = vadd.f32 %v569_v35, %v549_v43 }
  0x28   : > { %v536_v51 = vadd.f32 %v534_v37, %v514_v42 }
  0x29   : > { %v579_v50 = vadd.f32 %v577_v39, %v557_v46  ;;  %v593_v52 = vadd.f32 %v591_v41, %v571_v49 }
  0x2a   : > { %v558_v55 = vadd.f32 %v556_v45, %v536_v51 }
  0x2b   : > { %v601_v54 = vadd.f32 %v599_v47, %v579_v50  ;;  %1276 = vmatmul.mubr.msk.f32.vlgmr.msra.gmra.mxu0 %vm611_vm0, %v593_v52 }
  0x2c   : > { %v580_v57 = vadd.f32 %v578_v48, %v558_v55  ;;  %1298 = vmatpush3.msra.mxu0 %v791_v1 }
  0x2d   : > { %1294 = vmatprep.mubr.msk.f32.mxu1 %vm611_vm0, %v601_v54  ;;  %v782_v44 = vadd.f32 %v601_v54, %v592_v30  ;;  %1299 = vmatprep.subr.mxu0 %v790_v56 }
  0x2e   : > { %v602_v59 = vadd.f32 %v600_v53, %v580_v57  ;;  %1300 = vmatpush3.msra.mxu0 %v790_v56 }
  0x2f   : > { %1313 = vmatprep.mubr.msk.f32.mxu0 %vm611_vm0, %v782_v44  ;;  %1301 = vmatprep.subr.mxu0 %v789_v58 }
  0x30   : > { %1295 = vmatmul.mubr.msk.f32.vlgmr.msra.gmra.mxu1 %vm611_vm0, %v602_v59  ;;  %1302 = vmatpush3.msra.mxu0 %v789_v58  ;;  %v783_v1 = vadd.f32 %v602_v59, %v593_v52 }
  0x31   : > { %1303 = vmatprep.subr.mxu0 %v788_v60 }
  0x32   : > { %1304 = vmatpush3.msra.mxu0 %v788_v60 }
  0x33   : > { %1305 = vmatprep.subr.mxu0 %v787_v61 }
  0x34   : > { %1306 = vmatpush3.msra.mxu0 %v787_v61 }
  0x35   : > { %1307 = vmatprep.subr.mxu0 %v786_v62 }
  0x36   : > { %1308 = vmatpush3.msra.mxu0 %v786_v62 }
  0x37   : > { %1309 = vmatprep.subr.mxu0 %v785_v63 }
  0x38   : > { %1310 = vmatpush3.msra.mxu0 %v785_v63 }
  0x39   : > { %1311 = vmatprep.subr.mxu0 %v784_v0 }
  0x3a   : > { %1312 = vmatpush3.msra.mxu0 %v784_v0 }
  0x3b   : > { %1314 = vmatmul.mubr.msk.f32.vlgmr.msra.gmra.mxu0 %vm611_vm0, %v783_v1 }
  0xeb   : > { %v1277_v2 = vpop.f32.mrf.mxu0 }
  0xed   : > { %v684_v4 = vpop.f32.mrf.mxu0 }
  0xf0   : > { %v1296_v3 = vpop.f32.mrf.mxu1 }
  0xf1   : > { %v874_v5 = vsub.f32 %v1277_v2, %v1296_v3 }
  0xf2   : > { %v773_v6 = vpop.f32.mrf.mxu1 }
  0xf3   : > { %v873_v7 = vsub.f32 %v684_v4, %v773_v6  ;;  %880 = vst [vmem:[%s383_s12 + $0x8] sm:$0xff] %v874_v5  ;;  %v903_v8 = vmul.f32 %v874_v5, %v874_v5 }
  0xf5   : > { %879 = vst [vmem:[%s383_s12] sm:$0xff] %v873_v7  ;;  %v888_v9 = vadd.f32 %v874_v5, %v873_v7  ;;  %v902_v10 = vmul.f32 %v873_v7, %v873_v7 }
  0xf7   : > { %v904_v11 = vadd.f32 %v903_v8, %v902_v10  ;;  %v889_v12 = vrot.slane %v888_v9, 4 }
  0xf9   : > { %v905_v13 = vrot.slane %v904_v11, 4  ;;  %v890_v16 = vadd.f32 %v889_v12, %v888_v9 }
  0xfb   : > { %v1315_v14 = vpop.f32.mrf.mxu0  ;;  %v906_v20 = vadd.f32 %v905_v13, %v904_v11  ;;  %v891_v22 = vrot.slane %v890_v16, 2 }
  0xfc   : > { %v876_v15 = vsub.f32 %v1315_v14, %v1277_v2 }
  0xfd   : > { %v864_v17 = vpop.f32.mrf.mxu0  ;;  %v907_v28 = vrot.slane %v906_v20, 2  ;;  %v892_v32 = vadd.f32 %v891_v22, %v890_v16 }
  0xfe   : > { %v878_v18 = vsub.f32 %v876_v15, %v1296_v3  ;;  %v875_v19 = vsub.f32 %v864_v17, %v684_v4 }
  0xff   : > { %v908_v34 = vadd.f32 %v907_v28, %v906_v20  ;;  %v893_v40 = vrot.slane %v892_v32, 1 }
 0x100   : > { %882 = vst [vmem:[%s396_s14 + $0x8] sm:$0xff] %v878_v18  ;;  %v877_v21 = vsub.f32 %v875_v19, %v773_v6  ;;  %v912_v23 = vmul.f32 %v878_v18, %v878_v18  ;;  %v921_v24 = vmul.f32 %v878_v18, %v874_v5 }
 0x101   : > { %v909_v46 = vrot.slane %v908_v34, 1  ;;  %v894_v48 = vadd.f32 %v893_v40, %v892_v32 }
 0x102   : > { %881 = vst [vmem:[%s396_s14] sm:$0xff] %v877_v21  ;;  %v895_v25 = vadd.f32 %v878_v18, %v877_v21  ;;  %v911_v26 = vmul.f32 %v877_v21, %v877_v21  ;;  %v920_v27 = vmul.f32 %v877_v21, %v873_v7 }
 0x103   : > { %v910_v53 = vadd.f32 %v909_v46, %v908_v34 }
 0x104   : > { %v896_v29 = vrot.slane %v895_v25, 4  ;;  %v913_v30 = vadd.f32 %v912_v23, %v911_v26  ;;  %v922_v31 = vadd.f32 %v921_v24, %v920_v27 }
 0x106   : > { %v897_v33 = vadd.f32 %v896_v29, %v895_v25  ;;  %v914_v35 = vrot.slane %v913_v30, 4  ;;  %v923_v36 = vrot.slane %v922_v31, 4 }
 0x108   : > { %v898_v37 = vrot.slane %v897_v33, 2  ;;  %v915_v38 = vadd.f32 %v914_v35, %v913_v30  ;;  %v924_v39 = vadd.f32 %v923_v36, %v922_v31 }
 0x10a   : > { %v899_v41 = vadd.f32 %v898_v37, %v897_v33  ;;  %v916_v43 = vrot.slane %v915_v38, 2  ;;  %v925_v45 = vrot.slane %v924_v39, 2 }
 0x10c   : > { %v900_v47 = vrot.slane %v899_v41, 1  ;;  %v917_v42 = vadd.f32 %v916_v43, %v915_v38  ;;  %v926_v49 = vadd.f32 %v925_v45, %v924_v39 }
 0x10e   : > { %v901_v50 = vadd.f32 %v900_v47, %v899_v41  ;;  %v918_v51 = vrot.slane %v917_v42, 1  ;;  %v927_v52 = vrot.slane %v926_v49, 1 }
 0x110   : > { %v919_v54 = vadd.f32 %v918_v51, %v917_v42  ;;  %v928_v55 = vadd.f32 %v927_v52, %v926_v49  ;;  %v930_v56 = vsel %vm929_vm1, %v894_v48, %v901_v50 }
 0x111   : > { %v932_v44 = vsel %vm931_vm2, %v930_v56, %v910_v53 }
 0x112   : > { %v934_v57 = vsel %vm933_vm3, %v932_v44, %v919_v54 }
 0x113   : > { %v936_v58 = vsel %vm935_vm4, %v934_v57, %v928_v55 }
 0x114   : > { %v938_v59 = vsel %vm937_vm5, %v936_v58, 0.0 }
 0x115   : > { %946 = vst [vmem:[%s404_s18] sm:$0xff] %v938_v59 }
 0x116 PF: > { %s19_s29 = sadd.s32 1, %s1363_s29   ;;  %s1635_s27 = smov %s1359_s28 }
 0x117   : > { %p16_p5 = scmp.ge.s32.totalorder %s19_s29, 4   ;;  %s1636_s28 = smov %s1638_s30 }
 0x119   :  { %18 = sbr.rel (!%p16_p5) target bundleno = 2 (0x2), region = 115 }

</bundles_post_ra>
